<compile_context>
chip_gen: v6e
topology: v6e:2x2x1
jax: 0.10.0
libtpu: 0.0.40
codegen_flags: <defaults>
</compile_context>

<pallas_src>
import functools
import math

import jax
import jax.numpy as jnp
from jax.experimental import pallas as pl
from jax.experimental.pallas import tpu as pltpu


# ----------------------------- exact GELU -------------------------------------
def _erf(x):
    # Abramowitz & Stegun 7.1.26 polynomial, max abs error ~1.5e-7 (~ f32 eps).
    a1, a2, a3, a4, a5 = (0.254829592, -0.284496736, 1.421413741,
                          -1.453152027, 1.061405429)
    p = 0.3275911
    ax = jnp.abs(x)
    d = 1.0 + p * ax
    # divide -> EUP approx reciprocal + one Newton step (back to ~f32 accuracy)
    t = pl.reciprocal(d, approx=True)
    t = t * (2.0 - d * t)
    poly = ((((a5 * t + a4) * t + a3) * t + a2) * t + a1) * t
    y = 1.0 - poly * jnp.exp(-ax * ax)
    return jnp.where(x < 0.0, -y, y)


def _gelu(x):
    # Exact (erf-based) GELU matching nn.GELU() default.
    return 0.5 * x * (1.0 + _erf(x * 0.7071067811865475))


# ----------------------------- fused kernel -----------------------------------
def _autoint_kernel(num_heads, num_layers, use_residual, use_norm, use_act,
                    use_bf16,
                    # inputs
                    x_ref, w_emb_ref, b_emb_ref,
                    wq_ref, wk_ref, wv_ref, bq_ref, bk_ref, bv_ref,
                    wo_ref, bo_ref, gamma_ref, beta_ref,
                    w_fc1_ref, b_fc1_ref, w_fc2t_ref, b_fc2_ref,
                    # output
                    o_ref,
                    # scratch
                    h_ref):
    lyr = pl.program_id(0)

    # Optional bf16 MXU operands (f32 accumulation, f32 elementwise). Keep off
    # on v5e (no bf16 VPU/EUP there); default off for PyTorch f32 parity.
    cast = (lambda t: t.astype(jnp.bfloat16)) if use_bf16 else (lambda t: t)

    def mm(a, b):                      # 2-D MXU matmul, f32 accumulate
        return jnp.dot(cast(a), cast(b), preferred_element_type=jnp.float32)

    def bmm(eq, a, b):                 # leading-batch 3-D MXU matmul
        return jnp.einsum(eq, cast(a), cast(b),
                          preferred_element_type=jnp.float32)

    # ---- layer 0 only: embedding Linear (Dropout == identity at inference) ----
    @pl.when(lyr == 0)
    def _():
        h_ref[...] = mm(x_ref[...], w_emb_ref[...]) + b_emb_ref[...]   # (N, E)

    h = h_ref[...]                                                      # (N, E)
    n, e = h.shape
    hd = e // num_heads
    scale = 1.0 / math.sqrt(hd)

    # ---- attention block for layer `lyr` (weights streamed by BlockSpec) ----
    # Heads were pre-split in the wrapper's weight layout -> every contraction
    # below is a plain leading-batch matmul; no slices / stacks / concats.
    hb = jnp.broadcast_to(h, (num_heads, n, e))                         # (H,N,E)
    qh = (bmm('hne,hed->hnd', hb, wq_ref[...]) + bq_ref[...]) * scale   # (H,N,hd)
    kh = bmm('hne,hed->hnd', hb, wk_ref[...]) + bk_ref[...]
    vh = bmm('hne,hed->hnd', hb, wv_ref[...]) + bv_ref[...]

    s = bmm('hnd,hmd->hnm', qh, kh)                                     # (H,N,N)
    s = s - jnp.max(s, axis=-1, keepdims=True)
    # exp on the (H,N,N) scores dominates EUP work; run it in bf16 when the
    # bf16-MXU path is on (v6e/v7x) so it also feeds the MXU without a recast.
    p = jnp.exp(s.astype(jnp.bfloat16)) if use_bf16 else jnp.exp(s)
    denom = jnp.sum(p, axis=-1, keepdims=True, dtype=jnp.float32)       # (H,N,1)
    ctx = jnp.einsum('hnm,hmd->hnd', p, cast(vh),
                     preferred_element_type=jnp.float32)                # (H,N,hd)
    # normalize AFTER P@V on the small tensor; exact reciprocal (torch parity)
    ctx = ctx * pl.reciprocal(denom, approx=False)

    # out-projection: per-head partials (batched matmul) + cheap axis-0 sum
    y = bmm('hnd,hde->hne', ctx, wo_ref[...])                           # (H,N,E)
    y = jnp.sum(y, axis=0) + bo_ref[...]                                # (N, E)

    if use_norm:      # shared LayerNorm(E), eps=1e-5, biased variance (PyTorch)
        mu = jnp.mean(y, axis=-1, keepdims=True)
        var = jnp.mean(jnp.square(y - mu), axis=-1, keepdims=True)
        y = (y - mu) * jax.lax.rsqrt(var + 1e-5)
        y = y * gamma_ref[...] + beta_ref[...]
    if use_act:
        y = _gelu(y)
    if use_residual:
        y = y + h
    h_ref[...] = y

    # ---- last layer only: fc head, lane-dense (1, N) store ----
    @pl.when(lyr == num_layers - 1)
    def _():
        z = mm(y, w_fc1_ref[...]) + b_fc1_ref[...]
        z = _gelu(z)
        out = jnp.einsum('oe,ne->on', cast(w_fc2t_ref[...]), cast(z),
                         preferred_element_type=jnp.float32)            # (1, N)
        o_ref[...] = out + b_fc2_ref[0]


# ----------------------------- wrapper ----------------------------------------
def _derive_vmem_limit(args, n, e, num_heads):
    itemsize = 4
    operand_bytes = sum(int(a.size) for a in args) * itemsize           # upper bound
    hd = e // num_heads
    act_bytes = itemsize * (
        3 * n * e                        # h / y / residual temps
        + num_heads * n * e              # broadcast hb
        + 4 * num_heads * n * hd         # q,k,v heads + context
        + 2 * num_heads * n * n          # scores + probabilities
        + num_heads * n * e)             # per-head out-proj partials
    need = int(1.5 * (operand_bytes + act_bytes)) + (1 << 20)
    try:
        phys = int(pltpu.get_tpu_info().vmem_capacity_bytes)
    except Exception:                    # pragma: no cover - conservative fallback
        phys = 64 * 1024 * 1024          # v7x per-core floor
    return min(max(need, 32 * 1024 * 1024), int(0.9 * phys))


def autoint_forward(x, params, *, num_heads, use_residual=True,
                    use_normalization=True, use_activation=True,
                    use_bf16_matmul=False):
    n, f = x.shape
    e = params["w_emb"].shape[1]
    num_layers = len(params["layers"])
    hd = e // num_heads
    assert hd * num_heads == e

    # ---- fold the per-head split into the weight layout (free, outside kernel)
    def to_head_w(m):                    # (E, E) -> (H, E, hd)
        return m.reshape(e, num_heads, hd).transpose(1, 0, 2)

    wq_h, wk_h, wv_h, bq_h, bk_h, bv_h, wo_h, bo = [], [], [], [], [], [], [], []
    for lp in params["layers"]:
        w_qkv, b_qkv = lp["w_qkv"], lp["b_qkv"]        # (E,3E) = in_proj_w.T, (3E,)
        wq_h.append(to_head_w(w_qkv[:, :e]))
        wk_h.append(to_head_w(w_qkv[:, e:2 * e]))
        wv_h.append(to_head_w(w_qkv[:, 2 * e:]))
        bq_h.append(b_qkv[:e].reshape(num_heads, 1, hd))
        bk_h.append(b_qkv[e:2 * e].reshape(num_heads, 1, hd))
        bv_h.append(b_qkv[2 * e:].reshape(num_heads, 1, hd))
        wo_h.append(lp["w_out"].reshape(num_heads, hd, e))     # (H, hd, E)
        bo.append(lp["b_out"].reshape(1, e))
    st = lambda xs: jnp.stack(xs, 0)
    wq_h, wk_h, wv_h = st(wq_h), st(wk_h), st(wv_h)
    bq_h, bk_h, bv_h = st(bq_h), st(bk_h), st(bv_h)
    wo_h, bo = st(wo_h), st(bo)

    args = (
        x,
        params["w_emb"], params["b_emb"].reshape(1, -1),
        wq_h, wk_h, wv_h, bq_h, bk_h, bv_h, wo_h, bo,
        params["ln_gamma"].reshape(1, -1), params["ln_beta"].reshape(1, -1),
        params["w_fc1"], params["b_fc1"].reshape(1, -1),
        params["w_fc2"].T,                    # (1, E)
        params["b_fc2"].reshape(1,),          # scalar -> SMEM
    )

    resident2 = lambda shp: pl.BlockSpec(shp, lambda l: (0, 0))
    layer4 = lambda shp: pl.BlockSpec((None,) + shp, lambda l: (l, 0, 0, 0))
    layer3 = lambda shp: pl.BlockSpec((None,) + shp, lambda l: (l, 0, 0))

    in_specs = [
        resident2((n, f)),                       # x
        resident2((f, e)), resident2((1, e)),    # w_emb, b_emb
        layer4((num_heads, e, hd)),              # wq_h
        layer4((num_heads, e, hd)),              # wk_h
        layer4((num_heads, e, hd)),              # wv_h
        layer4((num_heads, 1, hd)),              # bq_h
        layer4((num_heads, 1, hd)),              # bk_h
        layer4((num_heads, 1, hd)),              # bv_h
        layer4((num_heads, hd, e)),              # wo_h
        layer3((1, e)),                          # bo
        resident2((1, e)), resident2((1, e)),    # gamma, beta
        resident2((e, e)), resident2((1, e)),    # w_fc1, b_fc1
        resident2((1, e)),                       # w_fc2t
        pl.BlockSpec(memory_space=pltpu.MemorySpace.SMEM),   # b_fc2 scalar
    ]
    out_specs = pl.BlockSpec((1, n), lambda l: (0, 0))

    kernel = functools.partial(
        _autoint_kernel, num_heads, num_layers,
        use_residual, use_normalization, use_activation, use_bf16_matmul)

    # advisory cost estimate so XLA schedules around the fused call sensibly
    flops = 2 * n * f * e + 2 * n * e * e + 2 * n * e
    flops += num_layers * (8 * n * e * e + 4 * n * n * e + 10 * n * e)
    transcendentals = (num_layers * (num_heads * n * n + num_heads * n
                                     + n + n * e) + n * e)
    bytes_accessed = 4 * (sum(int(a.size) for a in args) + n)

    out = pl.pallas_call(
        kernel,
        out_shape=jax.ShapeDtypeStruct((1, n), jnp.float32),
        grid=(num_layers,),
        in_specs=in_specs,
        out_specs=out_specs,
        scratch_shapes=[pltpu.VMEM((n, e), jnp.float32)],    # hidden state h
        cost_estimate=pl.CostEstimate(
            flops=flops, transcendentals=transcendentals,
            bytes_accessed=bytes_accessed),
        compiler_params=pltpu.CompilerParams(
            dimension_semantics=("arbitrary",),               # layers are sequential
            vmem_limit_bytes=_derive_vmem_limit(args, n, e, num_heads)),
    )(*args)
    return out[0]                     # == self.fc(x).squeeze(1) -> (N,)


# ----------------------------- deterministic parameter init -------------------
def init_params(key, in_features, embedding_dim, num_layers):
    state = {"key": key}

    def nxt():
        state["key"], sub = jax.random.split(state["key"])
        return sub

    def w(shape, s=0.1):
        return jax.random.normal(nxt(), shape, jnp.float32) * s

    params = {
        "w_emb": w((in_features, embedding_dim)),
        "b_emb": w((embedding_dim,), 0.01),
        "ln_gamma": jnp.ones((embedding_dim,), jnp.float32),  # nn.LayerNorm default
        "ln_beta": jnp.zeros((embedding_dim,), jnp.float32),
        "w_fc1": w((embedding_dim, embedding_dim)),
        "b_fc1": w((embedding_dim,), 0.01),
        "w_fc2": w((embedding_dim, 1)),
        "b_fc2": w((1,), 0.01),
        "layers": [],
    }
    for _ in range(num_layers):
        params["layers"].append({
            "w_qkv": w((embedding_dim, 3 * embedding_dim)),  # torch in_proj_weight.T
            "b_qkv": w((3 * embedding_dim,), 0.01),
            "w_out": w((embedding_dim, embedding_dim)),      # torch out_proj.weight.T
            "b_out": w((embedding_dim,), 0.01),
        })
    return params


# ----------------------------- main --------------------------------------------
if __name__ == "__main__":
    N, F, E, H, L = 8, 16, 32, 4, 2   # batch, in_features, emb_dim, heads, layers
    key = jax.random.PRNGKey(0)
    kx, kp = jax.random.split(key)
    x = jax.random.normal(kx, (N, F), jnp.float32)
    params = init_params(kp, F, E, L)

    y = autoint_forward(x, params, num_heads=H)
    y = jax.block_until_ready(y)
    assert y.shape == (N,) and y.dtype == jnp.float32
    assert bool(jnp.all(jnp.isfinite(y)))
    print("KERNEL_OK")
</pallas_src>

<mosaic_0001>
module attributes {stable_mosaic.version = 11 : i64} {
  func.func @_autoint_kernel(%arg0: i32, %arg1: memref<8x16xf32, #tpu.memory_space<vmem>>, %arg2: memref<16x32xf32, #tpu.memory_space<vmem>>, %arg3: memref<1x32xf32, #tpu.memory_space<vmem>>, %arg4: memref<1x4x32x8xf32, #tpu.memory_space<vmem>>, %arg5: memref<1x4x32x8xf32, #tpu.memory_space<vmem>>, %arg6: memref<1x4x32x8xf32, #tpu.memory_space<vmem>>, %arg7: memref<1x4x1x8xf32, #tpu.memory_space<vmem>>, %arg8: memref<1x4x1x8xf32, #tpu.memory_space<vmem>>, %arg9: memref<1x4x1x8xf32, #tpu.memory_space<vmem>>, %arg10: memref<1x4x8x32xf32, #tpu.memory_space<vmem>>, %arg11: memref<1x1x32xf32, #tpu.memory_space<vmem>>, %arg12: memref<1x32xf32, #tpu.memory_space<vmem>>, %arg13: memref<1x32xf32, #tpu.memory_space<vmem>>, %arg14: memref<32x32xf32, #tpu.memory_space<vmem>>, %arg15: memref<1x32xf32, #tpu.memory_space<vmem>>, %arg16: memref<1x32xf32, #tpu.memory_space<vmem>>, %arg17: memref<1xf32, #tpu.memory_space<smem>>, %arg18: memref<1x8xf32, #tpu.memory_space<vmem>>, %arg19: memref<8x32xf32, #tpu.memory_space<vmem>>) attributes {dimension_semantics = [#tpu.dimension_semantics<arbitrary>], iteration_bounds = array<i64: 2>, scalar_prefetch = 0 : i64, scratch_operands = 1 : i64, tpu.core_type = #tpu.core_type<tc>, window_params = [{pipeline_mode = #tpu.pipeline_mode<synchronous>, transform_indices = @transform_0, window_bounds = array<i64: 8, 16>}, {pipeline_mode = #tpu.pipeline_mode<synchronous>, transform_indices = @transform_1, window_bounds = array<i64: 16, 32>}, {pipeline_mode = #tpu.pipeline_mode<synchronous>, transform_indices = @transform_2, window_bounds = array<i64: 1, 32>}, {transform_indices = @transform_3, window_bounds = array<i64: 1, 4, 32, 8>}, {transform_indices = @transform_4, window_bounds = array<i64: 1, 4, 32, 8>}, {transform_indices = @transform_5, window_bounds = array<i64: 1, 4, 32, 8>}, {transform_indices = @transform_6, window_bounds = array<i64: 1, 4, 1, 8>}, {transform_indices = @transform_7, window_bounds = array<i64: 1, 4, 1, 8>}, {transform_indices = @transform_8, window_bounds = array<i64: 1, 4, 1, 8>}, {transform_indices = @transform_9, window_bounds = array<i64: 1, 4, 8, 32>}, {transform_indices = @transform_10, window_bounds = array<i64: 1, 1, 32>}, {pipeline_mode = #tpu.pipeline_mode<synchronous>, transform_indices = @transform_11, window_bounds = array<i64: 1, 32>}, {pipeline_mode = #tpu.pipeline_mode<synchronous>, transform_indices = @transform_12, window_bounds = array<i64: 1, 32>}, {pipeline_mode = #tpu.pipeline_mode<synchronous>, transform_indices = @transform_13, window_bounds = array<i64: 32, 32>}, {pipeline_mode = #tpu.pipeline_mode<synchronous>, transform_indices = @transform_14, window_bounds = array<i64: 1, 32>}, {pipeline_mode = #tpu.pipeline_mode<synchronous>, transform_indices = @transform_15, window_bounds = array<i64: 1, 32>}, {transform_indices = @transform_16, window_bounds = array<i64: 1>}, {pipeline_mode = #tpu.pipeline_mode<synchronous>, transform_indices = @transform_17, window_bounds = array<i64: 1, 8>}]} {
    %c0_i32 = arith.constant 0 : i32
    %0 = arith.cmpi eq, %arg0, %c0_i32 : i32
    %1 = arith.extui %0 : i1 to i32
    %c0_i32_0 = arith.constant 0 : i32
    %2 = arith.cmpi ne, %1, %c0_i32_0 : i32
    scf.if %2 {
      %c0_69 = arith.constant 0 : index
      %c0_70 = arith.constant 0 : index
      %121 = vector.load %arg1[%c0_69, %c0_70] : memref<8x16xf32, #tpu.memory_space<vmem>>, vector<8x16xf32>
      %c0_71 = arith.constant 0 : index
      %c0_72 = arith.constant 0 : index
      %122 = vector.load %arg2[%c0_71, %c0_72] : memref<16x32xf32, #tpu.memory_space<vmem>>, vector<16x32xf32>
      %cst_73 = arith.constant dense<0.000000e+00> : vector<8x32xf32>
      %123 = tpu.matmul %121, %122, %cst_73 {dimension_numbers = #tpu.dot_dimension_numbers<[1], [0], [0], [1], [0, 0, 1, 1], [], []>} : vector<8x16xf32>, vector<16x32xf32>, vector<8x32xf32> -> vector<8x32xf32>
      %c0_74 = arith.constant 0 : index
      %c0_75 = arith.constant 0 : index
      %124 = vector.load %arg3[%c0_74, %c0_75] : memref<1x32xf32, #tpu.memory_space<vmem>>, vector<1x32xf32>
      %125 = vector.broadcast %124 : vector<1x32xf32> to vector<8x32xf32>
      %126 = arith.addf %123, %125 : vector<8x32xf32>
      %c0_76 = arith.constant 0 : index
      %c0_77 = arith.constant 0 : index
      %127 = vector.load %arg19[%c0_76, %c0_77] : memref<8x32xf32, #tpu.memory_space<vmem>>, vector<8x32xf32>
      tpu.vector_store %arg19[%c0_76, %c0_77], %126 {strides = array<i32>} : memref<8x32xf32, #tpu.memory_space<vmem>>, vector<8x32xf32>,
    } else {
    }
    %c0 = arith.constant 0 : index
    %c0_1 = arith.constant 0 : index
    %3 = vector.load %arg19[%c0, %c0_1] : memref<8x32xf32, #tpu.memory_space<vmem>>, vector<8x32xf32>
    %4 = vector.shape_cast %3 : vector<8x32xf32> to vector<1x8x32xf32>
    %5 = vector.broadcast %4 : vector<1x8x32xf32> to vector<4x8x32xf32>
    %c0_2 = arith.constant 0 : index
    %c0_3 = arith.constant 0 : index
    %c0_4 = arith.constant 0 : index
    %c0_5 = arith.constant 0 : index
    %6 = vector.load %arg4[%c0_2, %c0_3, %c0_4, %c0_5] : memref<1x4x32x8xf32, #tpu.memory_space<vmem>>, vector<1x4x32x8xf32>
    %7 = vector.shape_cast %6 : vector<1x4x32x8xf32> to vector<4x32x8xf32>
    "tpu.trace_start"() <{level = 10 : i32, message = "hne,hed->hnd"}> : () -> ()
    %cst = arith.constant dense<0.000000e+00> : vector<4x8x8xf32>
    %8 = tpu.matmul %5, %7, %cst {dimension_numbers = #tpu.dot_dimension_numbers<[2], [1], [1], [2], [0, 0, 0, 1, 1, 2], [0], [0]>} : vector<4x8x32xf32>, vector<4x32x8xf32>, vector<4x8x8xf32> -> vector<4x8x8xf32>
    "tpu.trace_stop"() : () -> ()
    %c0_6 = arith.constant 0 : index
    %c0_7 = arith.constant 0 : index
    %c0_8 = arith.constant 0 : index
    %c0_9 = arith.constant 0 : index
    %9 = vector.load %arg7[%c0_6, %c0_7, %c0_8, %c0_9] : memref<1x4x1x8xf32, #tpu.memory_space<vmem>>, vector<1x4x1x8xf32>
    %10 = vector.shape_cast %9 : vector<1x4x1x8xf32> to vector<4x1x8xf32>
    %11 = vector.broadcast %10 : vector<4x1x8xf32> to vector<4x8x8xf32>
    %12 = arith.addf %8, %11 : vector<4x8x8xf32>
    %cst_10 = arith.constant 0.353553385 : f32
    %13 = vector.broadcast %cst_10 : f32 to vector<4x8x8xf32>
    %14 = arith.mulf %12, %13 : vector<4x8x8xf32>
    %c0_11 = arith.constant 0 : index
    %c0_12 = arith.constant 0 : index
    %c0_13 = arith.constant 0 : index
    %c0_14 = arith.constant 0 : index
    %15 = vector.load %arg5[%c0_11, %c0_12, %c0_13, %c0_14] : memref<1x4x32x8xf32, #tpu.memory_space<vmem>>, vector<1x4x32x8xf32>
    %16 = vector.shape_cast %15 : vector<1x4x32x8xf32> to vector<4x32x8xf32>
    "tpu.trace_start"() <{level = 10 : i32, message = "hne,hed->hnd"}> : () -> ()
    %cst_15 = arith.constant dense<0.000000e+00> : vector<4x8x8xf32>
    %17 = tpu.matmul %5, %16, %cst_15 {dimension_numbers = #tpu.dot_dimension_numbers<[2], [1], [1], [2], [0, 0, 0, 1, 1, 2], [0], [0]>} : vector<4x8x32xf32>, vector<4x32x8xf32>, vector<4x8x8xf32> -> vector<4x8x8xf32>
    "tpu.trace_stop"() : () -> ()
    %c0_16 = arith.constant 0 : index
    %c0_17 = arith.constant 0 : index
    %c0_18 = arith.constant 0 : index
    %c0_19 = arith.constant 0 : index
    %18 = vector.load %arg8[%c0_16, %c0_17, %c0_18, %c0_19] : memref<1x4x1x8xf32, #tpu.memory_space<vmem>>, vector<1x4x1x8xf32>
    %19 = vector.shape_cast %18 : vector<1x4x1x8xf32> to vector<4x1x8xf32>
    %20 = vector.broadcast %19 : vector<4x1x8xf32> to vector<4x8x8xf32>
    %21 = arith.addf %17, %20 : vector<4x8x8xf32>
    %c0_20 = arith.constant 0 : index
    %c0_21 = arith.constant 0 : index
    %c0_22 = arith.constant 0 : index
    %c0_23 = arith.constant 0 : index
    %22 = vector.load %arg6[%c0_20, %c0_21, %c0_22, %c0_23] : memref<1x4x32x8xf32, #tpu.memory_space<vmem>>, vector<1x4x32x8xf32>
    %23 = vector.shape_cast %22 : vector<1x4x32x8xf32> to vector<4x32x8xf32>
    "tpu.trace_start"() <{level = 10 : i32, message = "hne,hed->hnd"}> : () -> ()
    %cst_24 = arith.constant dense<0.000000e+00> : vector<4x8x8xf32>
    %24 = tpu.matmul %5, %23, %cst_24 {dimension_numbers = #tpu.dot_dimension_numbers<[2], [1], [1], [2], [0, 0, 0, 1, 1, 2], [0], [0]>} : vector<4x8x32xf32>, vector<4x32x8xf32>, vector<4x8x8xf32> -> vector<4x8x8xf32>
    "tpu.trace_stop"() : () -> ()
    %c0_25 = arith.constant 0 : index
    %c0_26 = arith.constant 0 : index
    %c0_27 = arith.constant 0 : index
    %c0_28 = arith.constant 0 : index
    %25 = vector.load %arg9[%c0_25, %c0_26, %c0_27, %c0_28] : memref<1x4x1x8xf32, #tpu.memory_space<vmem>>, vector<1x4x1x8xf32>
    %26 = vector.shape_cast %25 : vector<1x4x1x8xf32> to vector<4x1x8xf32>
    %27 = vector.broadcast %26 : vector<4x1x8xf32> to vector<4x8x8xf32>
    %28 = arith.addf %24, %27 : vector<4x8x8xf32>
    "tpu.trace_start"() <{level = 10 : i32, message = "hnd,hmd->hnm"}> : () -> ()
    %cst_29 = arith.constant dense<0.000000e+00> : vector<4x8x8xf32>
    %29 = tpu.matmul %14, %21, %cst_29 {dimension_numbers = #tpu.dot_dimension_numbers<[2], [2], [1], [1], [0, 0, 0, 1, 1, 1], [0], [0]>} : vector<4x8x8xf32>, vector<4x8x8xf32>, vector<4x8x8xf32> -> vector<4x8x8xf32>
    "tpu.trace_stop"() : () -> ()
    %cst_30 = arith.constant dense<0xFF800000> : vector<4x8xf32>
    %30 = vector.multi_reduction <maximumf>, %29, %cst_30 [2] : vector<4x8x8xf32> to vector<4x8xf32>
    %31 = vector.shape_cast %30 : vector<4x8xf32> to vector<4x8x1xf32>
    %32 = vector.broadcast %31 : vector<4x8x1xf32> to vector<4x8x8xf32>
    %33 = arith.subf %29, %32 : vector<4x8x8xf32>
    %34 = math.exp %33 : vector<4x8x8xf32>
    %cst_31 = arith.constant dense<0.000000e+00> : vector<4x8xf32>
    %35 = vector.multi_reduction <add>, %34, %cst_31 [2] : vector<4x8x8xf32> to vector<4x8xf32>
    %36 = vector.shape_cast %35 : vector<4x8xf32> to vector<4x8x1xf32>
    "tpu.trace_start"() <{level = 10 : i32, message = "hnm,hmd->hnd"}> : () -> ()
    %cst_32 = arith.constant dense<0.000000e+00> : vector<4x8x8xf32>
    %37 = tpu.matmul %34, %28, %cst_32 {dimension_numbers = #tpu.dot_dimension_numbers<[2], [1], [1], [2], [0, 0, 0, 1, 1, 2], [0], [0]>} : vector<4x8x8xf32>, vector<4x8x8xf32>, vector<4x8x8xf32> -> vector<4x8x8xf32>
    "tpu.trace_stop"() : () -> ()
    %38 = tpu.reciprocal %36 : vector<4x8x1xf32> -> vector<4x8x1xf32>
    %39 = vector.broadcast %38 : vector<4x8x1xf32> to vector<4x8x8xf32>
    %40 = arith.mulf %37, %39 : vector<4x8x8xf32>
    %c0_33 = arith.constant 0 : index
    %c0_34 = arith.constant 0 : index
    %c0_35 = arith.constant 0 : index
    %c0_36 = arith.constant 0 : index
    %41 = vector.load %arg10[%c0_33, %c0_34, %c0_35, %c0_36] : memref<1x4x8x32xf32, #tpu.memory_space<vmem>>, vector<1x4x8x32xf32>
    %42 = vector.shape_cast %41 : vector<1x4x8x32xf32> to vector<4x8x32xf32>
    "tpu.trace_start"() <{level = 10 : i32, message = "hnd,hde->hne"}> : () -> ()
    %cst_37 = arith.constant dense<0.000000e+00> : vector<4x8x32xf32>
    %43 = tpu.matmul %40, %42, %cst_37 {dimension_numbers = #tpu.dot_dimension_numbers<[2], [1], [1], [2], [0, 0, 0, 1, 1, 2], [0], [0]>} : vector<4x8x8xf32>, vector<4x8x32xf32>, vector<4x8x32xf32> -> vector<4x8x32xf32>
    "tpu.trace_stop"() : () -> ()
    %cst_38 = arith.constant dense<0.000000e+00> : vector<8x32xf32>
    %44 = vector.multi_reduction <add>, %43, %cst_38 [0] : vector<4x8x32xf32> to vector<8x32xf32>
    %c0_39 = arith.constant 0 : index
    %c0_40 = arith.constant 0 : index
    %c0_41 = arith.constant 0 : index
    %45 = vector.load %arg11[%c0_39, %c0_40, %c0_41] : memref<1x1x32xf32, #tpu.memory_space<vmem>>, vector<1x1x32xf32>
    %46 = vector.shape_cast %45 : vector<1x1x32xf32> to vector<1x32xf32>
    %47 = vector.broadcast %46 : vector<1x32xf32> to vector<8x32xf32>
    %48 = arith.addf %44, %47 : vector<8x32xf32>
    %cst_42 = arith.constant dense<0.000000e+00> : vector<8xf32>
    %49 = vector.multi_reduction <add>, %48, %cst_42 [1] : vector<8x32xf32> to vector<8xf32>
    %50 = vector.shape_cast %49 : vector<8xf32> to vector<8x1xf32>
    %cst_43 = arith.constant 3.200000e+01 : f32
    %51 = vector.broadcast %cst_43 : f32 to vector<8x1xf32>
    %52 = arith.divf %50, %51 : vector<8x1xf32>
    %53 = vector.broadcast %52 : vector<8x1xf32> to vector<8x32xf32>
    %54 = arith.subf %48, %53 : vector<8x32xf32>
    %55 = arith.mulf %54, %54 : vector<8x32xf32>
    %cst_44 = arith.constant dense<0.000000e+00> : vector<8xf32>
    %56 = vector.multi_reduction <add>, %55, %cst_44 [1] : vector<8x32xf32> to vector<8xf32>
    %57 = vector.shape_cast %56 : vector<8xf32> to vector<8x1xf32>
    %cst_45 = arith.constant 3.200000e+01 : f32
    %58 = vector.broadcast %cst_45 : f32 to vector<8x1xf32>
    %59 = arith.divf %57, %58 : vector<8x1xf32>
    %60 = vector.broadcast %52 : vector<8x1xf32> to vector<8x32xf32>
    %61 = arith.subf %48, %60 : vector<8x32xf32>
    %cst_46 = arith.constant 9.99999974E-6 : f32
    %62 = vector.broadcast %cst_46 : f32 to vector<8x1xf32>
    %63 = arith.addf %59, %62 : vector<8x1xf32>
    %64 = math.rsqrt %63 : vector<8x1xf32>
    %65 = vector.broadcast %64 : vector<8x1xf32> to vector<8x32xf32>
    %66 = arith.mulf %61, %65 : vector<8x32xf32>
    %c0_47 = arith.constant 0 : index
    %c0_48 = arith.constant 0 : index
    %67 = vector.load %arg12[%c0_47, %c0_48] : memref<1x32xf32, #tpu.memory_space<vmem>>, vector<1x32xf32>
    %68 = vector.broadcast %67 : vector<1x32xf32> to vector<8x32xf32>
    %69 = arith.mulf %66, %68 : vector<8x32xf32>
    %c0_49 = arith.constant 0 : index
    %c0_50 = arith.constant 0 : index
    %70 = vector.load %arg13[%c0_49, %c0_50] : memref<1x32xf32, #tpu.memory_space<vmem>>, vector<1x32xf32>
    %71 = vector.broadcast %70 : vector<1x32xf32> to vector<8x32xf32>
    %72 = arith.addf %69, %71 : vector<8x32xf32>
    %cst_51 = arith.constant 5.000000e-01 : f32
    %73 = vector.broadcast %cst_51 : f32 to vector<8x32xf32>
    %74 = arith.mulf %73, %72 : vector<8x32xf32>
    %cst_52 = arith.constant 0.707106769 : f32
    %75 = vector.broadcast %cst_52 : f32 to vector<8x32xf32>
    %76 = arith.mulf %72, %75 : vector<8x32xf32>
    %77 = math.absf %76 : vector<8x32xf32>
    %cst_53 = arith.constant 0.327591091 : f32
    %78 = vector.broadcast %cst_53 : f32 to vector<8x32xf32>
    %79 = arith.mulf %78, %77 : vector<8x32xf32>
    %cst_54 = arith.constant 1.000000e+00 : f32
    %80 = vector.broadcast %cst_54 : f32 to vector<8x32xf32>
    %81 = arith.addf %80, %79 : vector<8x32xf32>
    %82 = tpu.reciprocal %81 {approx = true} : vector<8x32xf32> -> vector<8x32xf32>
    %83 = arith.mulf %81, %82 : vector<8x32xf32>
    %cst_55 = arith.constant 2.000000e+00 : f32
    %84 = vector.broadcast %cst_55 : f32 to vector<8x32xf32>
    %85 = arith.subf %84, %83 : vector<8x32xf32>
    %86 = arith.mulf %82, %85 : vector<8x32xf32>
    %cst_56 = arith.constant 1.06140542 : f32
    %87 = vector.broadcast %cst_56 : f32 to vector<8x32xf32>
    %88 = arith.mulf %87, %86 : vector<8x32xf32>
    %cst_57 = arith.constant -1.45315206 : f32
    %89 = vector.broadcast %cst_57 : f32 to vector<8x32xf32>
    %90 = arith.addf %88, %89 : vector<8x32xf32>
    %91 = arith.mulf %90, %86 : vector<8x32xf32>
    %cst_58 = arith.constant 1.42141378 : f32
    %92 = vector.broadcast %cst_58 : f32 to vector<8x32xf32>
    %93 = arith.addf %91, %92 : vector<8x32xf32>
    %94 = arith.mulf %93, %86 : vector<8x32xf32>
    %cst_59 = arith.constant -0.284496725 : f32
    %95 = vector.broadcast %cst_59 : f32 to vector<8x32xf32>
    %96 = arith.addf %94, %95 : vector<8x32xf32>
    %97 = arith.mulf %96, %86 : vector<8x32xf32>
    %cst_60 = arith.constant 0.254829586 : f32
    %98 = vector.broadcast %cst_60 : f32 to vector<8x32xf32>
    %99 = arith.addf %97, %98 : vector<8x32xf32>
    %100 = arith.mulf %99, %86 : vector<8x32xf32>
    %cst_61 = arith.constant 0.000000e+00 : f32
    %101 = vector.broadcast %cst_61 : f32 to vector<8x32xf32>
    %102 = arith.subf %101, %77 : vector<8x32xf32>
    %103 = arith.mulf %102, %77 : vector<8x32xf32>
    %104 = math.exp %103 : vector<8x32xf32>
    %105 = arith.mulf %100, %104 : vector<8x32xf32>
    %cst_62 = arith.constant 1.000000e+00 : f32
    %106 = vector.broadcast %cst_62 : f32 to vector<8x32xf32>
    %107 = arith.subf %106, %105 : vector<8x32xf32>
    %cst_63 = arith.constant 0.000000e+00 : f32
    %108 = vector.broadcast %cst_63 : f32 to vector<8x32xf32>
    %109 = arith.cmpf olt, %76, %108 : vector<8x32xf32>
    %cst_64 = arith.constant 0.000000e+00 : f32
    %110 = vector.broadcast %cst_64 : f32 to vector<8x32xf32>
    %111 = arith.subf %110, %107 : vector<8x32xf32>
    %112 = arith.select %109, %111, %107 : vector<8x32xi1>, vector<8x32xf32>
    %cst_65 = arith.constant 1.000000e+00 : f32
    %113 = vector.broadcast %cst_65 : f32 to vector<8x32xf32>
    %114 = arith.addf %113, %112 : vector<8x32xf32>
    %115 = arith.mulf %74, %114 : vector<8x32xf32>
    %116 = arith.addf %115, %3 : vector<8x32xf32>
    %c0_66 = arith.constant 0 : index
    %c0_67 = arith.constant 0 : index
    %117 = vector.load %arg19[%c0_66, %c0_67] : memref<8x32xf32, #tpu.memory_space<vmem>>, vector<8x32xf32>
    tpu.vector_store %arg19[%c0_66, %c0_67], %116 {strides = array<i32>} : memref<8x32xf32, #tpu.memory_space<vmem>>, vector<8x32xf32>,
    %c1_i32 = arith.constant 1 : i32
    %118 = arith.cmpi eq, %arg0, %c1_i32 : i32
    %119 = arith.extui %118 : i1 to i32
    %c0_i32_68 = arith.constant 0 : i32
    %120 = arith.cmpi ne, %119, %c0_i32_68 : i32
    scf.if %120 {
      %c0_69 = arith.constant 0 : index
      %c0_70 = arith.constant 0 : index
      %121 = vector.load %arg14[%c0_69, %c0_70] : memref<32x32xf32, #tpu.memory_space<vmem>>, vector<32x32xf32>
      %cst_71 = arith.constant dense<0.000000e+00> : vector<8x32xf32>
      %122 = tpu.matmul %116, %121, %cst_71 {dimension_numbers = #tpu.dot_dimension_numbers<[1], [0], [0], [1], [0, 0, 1, 1], [], []>} : vector<8x32xf32>, vector<32x32xf32>, vector<8x32xf32> -> vector<8x32xf32>
      %c0_72 = arith.constant 0 : index
      %c0_73 = arith.constant 0 : index
      %123 = vector.load %arg15[%c0_72, %c0_73] : memref<1x32xf32, #tpu.memory_space<vmem>>, vector<1x32xf32>
      %124 = vector.broadcast %123 : vector<1x32xf32> to vector<8x32xf32>
      %125 = arith.addf %122, %124 : vector<8x32xf32>
      %cst_74 = arith.constant 5.000000e-01 : f32
      %126 = vector.broadcast %cst_74 : f32 to vector<8x32xf32>
      %127 = arith.mulf %126, %125 : vector<8x32xf32>
      %cst_75 = arith.constant 0.707106769 : f32
      %128 = vector.broadcast %cst_75 : f32 to vector<8x32xf32>
      %129 = arith.mulf %125, %128 : vector<8x32xf32>
      %130 = math.absf %129 : vector<8x32xf32>
      %cst_76 = arith.constant 0.327591091 : f32
      %131 = vector.broadcast %cst_76 : f32 to vector<8x32xf32>
      %132 = arith.mulf %131, %130 : vector<8x32xf32>
      %cst_77 = arith.constant 1.000000e+00 : f32
      %133 = vector.broadcast %cst_77 : f32 to vector<8x32xf32>
      %134 = arith.addf %133, %132 : vector<8x32xf32>
      %135 = tpu.reciprocal %134 {approx = true} : vector<8x32xf32> -> vector<8x32xf32>
      %136 = arith.mulf %134, %135 : vector<8x32xf32>
      %cst_78 = arith.constant 2.000000e+00 : f32
      %137 = vector.broadcast %cst_78 : f32 to vector<8x32xf32>
      %138 = arith.subf %137, %136 : vector<8x32xf32>
      %139 = arith.mulf %135, %138 : vector<8x32xf32>
      %cst_79 = arith.constant 1.06140542 : f32
      %140 = vector.broadcast %cst_79 : f32 to vector<8x32xf32>
      %141 = arith.mulf %140, %139 : vector<8x32xf32>
      %cst_80 = arith.constant -1.45315206 : f32
      %142 = vector.broadcast %cst_80 : f32 to vector<8x32xf32>
      %143 = arith.addf %141, %142 : vector<8x32xf32>
      %144 = arith.mulf %143, %139 : vector<8x32xf32>
      %cst_81 = arith.constant 1.42141378 : f32
      %145 = vector.broadcast %cst_81 : f32 to vector<8x32xf32>
      %146 = arith.addf %144, %145 : vector<8x32xf32>
      %147 = arith.mulf %146, %139 : vector<8x32xf32>
      %cst_82 = arith.constant -0.284496725 : f32
      %148 = vector.broadcast %cst_82 : f32 to vector<8x32xf32>
      %149 = arith.addf %147, %148 : vector<8x32xf32>
      %150 = arith.mulf %149, %139 : vector<8x32xf32>
      %cst_83 = arith.constant 0.254829586 : f32
      %151 = vector.broadcast %cst_83 : f32 to vector<8x32xf32>
      %152 = arith.addf %150, %151 : vector<8x32xf32>
      %153 = arith.mulf %152, %139 : vector<8x32xf32>
      %cst_84 = arith.constant 0.000000e+00 : f32
      %154 = vector.broadcast %cst_84 : f32 to vector<8x32xf32>
      %155 = arith.subf %154, %130 : vector<8x32xf32>
      %156 = arith.mulf %155, %130 : vector<8x32xf32>
      %157 = math.exp %156 : vector<8x32xf32>
      %158 = arith.mulf %153, %157 : vector<8x32xf32>
      %cst_85 = arith.constant 1.000000e+00 : f32
      %159 = vector.broadcast %cst_85 : f32 to vector<8x32xf32>
      %160 = arith.subf %159, %158 : vector<8x32xf32>
      %cst_86 = arith.constant 0.000000e+00 : f32
      %161 = vector.broadcast %cst_86 : f32 to vector<8x32xf32>
      %162 = arith.cmpf olt, %129, %161 : vector<8x32xf32>
      %cst_87 = arith.constant 0.000000e+00 : f32
      %163 = vector.broadcast %cst_87 : f32 to vector<8x32xf32>
      %164 = arith.subf %163, %160 : vector<8x32xf32>
      %165 = arith.select %162, %164, %160 : vector<8x32xi1>, vector<8x32xf32>
      %cst_88 = arith.constant 1.000000e+00 : f32
      %166 = vector.broadcast %cst_88 : f32 to vector<8x32xf32>
      %167 = arith.addf %166, %165 : vector<8x32xf32>
      %168 = arith.mulf %127, %167 : vector<8x32xf32>
      %c0_89 = arith.constant 0 : index
      %c0_90 = arith.constant 0 : index
      %169 = vector.load %arg16[%c0_89, %c0_90] : memref<1x32xf32, #tpu.memory_space<vmem>>, vector<1x32xf32>
      "tpu.trace_start"() <{level = 10 : i32, message = "oe,ne->on"}> : () -> ()
      %cst_91 = arith.constant dense<0.000000e+00> : vector<1x8xf32>
      %170 = tpu.matmul %169, %168, %cst_91 {dimension_numbers = #tpu.dot_dimension_numbers<[1], [1], [0], [0], [0, 0, 1, 0], [], []>} : vector<1x32xf32>, vector<8x32xf32>, vector<1x8xf32> -> vector<1x8xf32>
      "tpu.trace_stop"() : () -> ()
      %c0_92 = arith.constant 0 : index
      %171 = memref.load %arg17[%c0_92] : memref<1xf32, #tpu.memory_space<smem>>
      %172 = vector.broadcast %171 : f32 to vector<1x8xf32>
      %173 = arith.addf %170, %172 : vector<1x8xf32>
      %c0_93 = arith.constant 0 : index
      %c0_94 = arith.constant 0 : index
      %174 = vector.load %arg18[%c0_93, %c0_94] : memref<1x8xf32, #tpu.memory_space<vmem>>, vector<1x8xf32>
      tpu.vector_store %arg18[%c0_93, %c0_94], %173 {strides = array<i32>} : memref<1x8xf32, #tpu.memory_space<vmem>>, vector<1x8xf32>,
    } else {
    }
    return
  }
  func.func @transform_0(%arg0: i32) -> (i32, i32) {
    %c0_i32 = arith.constant 0 : i32
    %c0_i32_0 = arith.constant 0 : i32
    %c0_i32_1 = arith.constant 0 : i32
    return %c0_i32, %c0_i32_0 : i32, i32
  }
  func.func @transform_1(%arg0: i32) -> (i32, i32) {
    %c0_i32 = arith.constant 0 : i32
    %c0_i32_0 = arith.constant 0 : i32
    %c0_i32_1 = arith.constant 0 : i32
    return %c0_i32, %c0_i32_0 : i32, i32
  }
  func.func @transform_2(%arg0: i32) -> (i32, i32) {
    %c0_i32 = arith.constant 0 : i32
    %c0_i32_0 = arith.constant 0 : i32
    %c0_i32_1 = arith.constant 0 : i32
    return %c0_i32, %c0_i32_0 : i32, i32
  }
  func.func @transform_3(%arg0: i32) -> (i32, i32, i32, i32) {
    %c0_i32 = arith.constant 0 : i32
    %c0_i32_0 = arith.constant 0 : i32
    %c0_i32_1 = arith.constant 0 : i32
    %c0_i32_2 = arith.constant 0 : i32
    return %arg0, %c0_i32, %c0_i32_0, %c0_i32_1 : i32, i32, i32, i32
  }
  func.func @transform_4(%arg0: i32) -> (i32, i32, i32, i32) {
    %c0_i32 = arith.constant 0 : i32
    %c0_i32_0 = arith.constant 0 : i32
    %c0_i32_1 = arith.constant 0 : i32
    %c0_i32_2 = arith.constant 0 : i32
    return %arg0, %c0_i32, %c0_i32_0, %c0_i32_1 : i32, i32, i32, i32
  }
  func.func @transform_5(%arg0: i32) -> (i32, i32, i32, i32) {
    %c0_i32 = arith.constant 0 : i32
    %c0_i32_0 = arith.constant 0 : i32
    %c0_i32_1 = arith.constant 0 : i32
    %c0_i32_2 = arith.constant 0 : i32
    return %arg0, %c0_i32, %c0_i32_0, %c0_i32_1 : i32, i32, i32, i32
  }
  func.func @transform_6(%arg0: i32) -> (i32, i32, i32, i32) {
    %c0_i32 = arith.constant 0 : i32
    %c0_i32_0 = arith.constant 0 : i32
    %c0_i32_1 = arith.constant 0 : i32
    %c0_i32_2 = arith.constant 0 : i32
    return %arg0, %c0_i32, %c0_i32_0, %c0_i32_1 : i32, i32, i32, i32
  }
  func.func @transform_7(%arg0: i32) -> (i32, i32, i32, i32) {
    %c0_i32 = arith.constant 0 : i32
    %c0_i32_0 = arith.constant 0 : i32
    %c0_i32_1 = arith.constant 0 : i32
    %c0_i32_2 = arith.constant 0 : i32
    return %arg0, %c0_i32, %c0_i32_0, %c0_i32_1 : i32, i32, i32, i32
  }
  func.func @transform_8(%arg0: i32) -> (i32, i32, i32, i32) {
    %c0_i32 = arith.constant 0 : i32
    %c0_i32_0 = arith.constant 0 : i32
    %c0_i32_1 = arith.constant 0 : i32
    %c0_i32_2 = arith.constant 0 : i32
    return %arg0, %c0_i32, %c0_i32_0, %c0_i32_1 : i32, i32, i32, i32
  }
  func.func @transform_9(%arg0: i32) -> (i32, i32, i32, i32) {
    %c0_i32 = arith.constant 0 : i32
    %c0_i32_0 = arith.constant 0 : i32
    %c0_i32_1 = arith.constant 0 : i32
    %c0_i32_2 = arith.constant 0 : i32
    return %arg0, %c0_i32, %c0_i32_0, %c0_i32_1 : i32, i32, i32, i32
  }
  func.func @transform_10(%arg0: i32) -> (i32, i32, i32) {
    %c0_i32 = arith.constant 0 : i32
    %c0_i32_0 = arith.constant 0 : i32
    %c0_i32_1 = arith.constant 0 : i32
    return %arg0, %c0_i32, %c0_i32_0 : i32, i32, i32
  }
  func.func @transform_11(%arg0: i32) -> (i32, i32) {
    %c0_i32 = arith.constant 0 : i32
    %c0_i32_0 = arith.constant 0 : i32
    %c0_i32_1 = arith.constant 0 : i32
    return %c0_i32, %c0_i32_0 : i32, i32
  }
  func.func @transform_12(%arg0: i32) -> (i32, i32) {
    %c0_i32 = arith.constant 0 : i32
    %c0_i32_0 = arith.constant 0 : i32
    %c0_i32_1 = arith.constant 0 : i32
    return %c0_i32, %c0_i32_0 : i32, i32
  }
  func.func @transform_13(%arg0: i32) -> (i32, i32) {
    %c0_i32 = arith.constant 0 : i32
    %c0_i32_0 = arith.constant 0 : i32
    %c0_i32_1 = arith.constant 0 : i32
    return %c0_i32, %c0_i32_0 : i32, i32
  }
  func.func @transform_14(%arg0: i32) -> (i32, i32) {
    %c0_i32 = arith.constant 0 : i32
    %c0_i32_0 = arith.constant 0 : i32
    %c0_i32_1 = arith.constant 0 : i32
    return %c0_i32, %c0_i32_0 : i32, i32
  }
  func.func @transform_15(%arg0: i32) -> (i32, i32) {
    %c0_i32 = arith.constant 0 : i32
    %c0_i32_0 = arith.constant 0 : i32
    %c0_i32_1 = arith.constant 0 : i32
    return %c0_i32, %c0_i32_0 : i32, i32
  }
  func.func @transform_16(%arg0: i32) -> i32 {
    %c0_i32 = arith.constant 0 : i32
    %c0_i32_0 = arith.constant 0 : i32
    return %c0_i32 : i32
  }
  func.func @transform_17(%arg0: i32) -> (i32, i32) {
    %c0_i32 = arith.constant 0 : i32
    %c0_i32_0 = arith.constant 0 : i32
    %c0_i32_1 = arith.constant 0 : i32
    return %c0_i32, %c0_i32_0 : i32, i32
  }
}

</mosaic_0001>

<bundles_post_ra>
// kernel: tpu_custom_call.1
= control target key start
LH: loop header
LB: loop body
LE: loop exit
PB: predicated region body
PF: predicated region fallthrough
CT: control target
= control target key end

     0   :  { %s3983_s0 = inlined_call_operand.vmem [shape: f32[8,16], index: 0, kind: input, shape index: {}]   ;;  %s3984_s1 = inlined_call_operand.vmem [shape: f32[16,32], index: 1, kind: input, shape index: {}]   ;;  %s3985_s2 = inlined_call_operand.vmem [shape: f32[1,32], index: 2, kind: input, shape index: {}]   ;;  %s3986_s3 = inlined_call_operand.vmem [shape: f32[2,4,32,8], index: 3, kind: input, shape index: {}]   ;;  %s3987_s4 = inlined_call_operand.vmem [shape: f32[2,4,32,8], index: 4, kind: input, shape index: {}]   ;;  %s3988_s5 = inlined_call_operand.vmem [shape: f32[2,4,32,8], index: 5, kind: input, shape index: {}]   ;;  %s3989_s6 = inlined_call_operand.vmem [shape: f32[2,4,1,8], index: 6, kind: input, shape index: {}]   ;;  %s3990_s7 = inlined_call_operand.vmem [shape: f32[2,4,1,8], index: 7, kind: input, shape index: {}]   ;;  %s3991_s8 = inlined_call_operand.vmem [shape: f32[2,4,1,8], index: 8, kind: input, shape index: {}]   ;;  %s3992_s9 = inlined_call_operand.vmem [shape: f32[2,4,8,32], index: 9, kind: input, shape index: {}]   ;;  %s3993_s10 = inlined_call_operand.vmem [shape: f32[2,1,32], index: 10, kind: input, shape index: {}]   ;;  %s3994_s11 = inlined_call_operand.vmem [shape: f32[1,32], index: 11, kind: input, shape index: {}]   ;;  %s3995_s12 = inlined_call_operand.vmem [shape: f32[1,32], index: 12, kind: input, shape index: {}]   ;;  %s3996_s13 = inlined_call_operand.vmem [shape: f32[32,32], index: 13, kind: input, shape index: {}]   ;;  %s3997_s14 = inlined_call_operand.vmem [shape: f32[1,32], index: 14, kind: input, shape index: {}]   ;;  %s3998_s15 = inlined_call_operand.vmem [shape: f32[1,32], index: 15, kind: input, shape index: {}]   ;;  %s3999_s16 = inlined_call_operand.<no memory space> [shape: f32[1], index: 16, kind: input, shape index: {}]   ;;  %s4000_s17 = inlined_call_operand.hbm [shape: f32[1,8], index: 17, kind: output, shape index: {}]  }
   0x1   :  { %4003 = sst [smem:[#allocation8_spill]] %s3983_s0 }
   0x2   :  { %4004 = sst [smem:[#allocation9_spill]] %s3984_s1 }
   0x3   :  { %4005 = sst [smem:[#allocation10_spill]] %s3986_s3 }
   0x4   :  { %4006 = sst [smem:[#allocation11_spill]] %s3987_s4 }
   0x5   :  { %4007 = sst [smem:[#allocation12_spill]] %s3988_s5 }
   0x6   :  { %4008 = sst [smem:[#allocation13_spill]] %s3998_s15 }
   0x7   :  { %4009 = sst [smem:[#allocation14_spill]] %s4000_s17 }
   0x8   :  { %22 = sst [smem:[#allocation3]] %s3999_s16 }
   0x9   :  { %23 = vsyncpa [#allocation5], 0  ;;  %s3636_s26 = smov 0  }
   0xa LB: > { %4010 = sst [smem:[#allocation7_spill]] %s3534_s26  ;;  %s3642_s27 = sadd.s32 4294967295, %s3534_s26   ;;  %s3534_s26 = sphi %s3636_s26, %s29_s26  }
   0xb   : > { %p3073_p0 = scmp.ge.s32.totalorder %s3534_s26, 1  ;;  %p549_p1 = scmp.lt.s32.totalorder %s3534_s26, 3 }
   0xd   : > { %p550_p2 = pnand %p3073_p0, %p549_p1 }
   0xe   : > { %p626_p3 = scmp.lt.s32.totalorder (!%p550_p2), %s3642_s27, 1  ;;  %s4011_s3 = sld [smem:[#allocation10_spill]] (!%p550_p2) }
   0xf   : > { %553 = sbr.rel (%p550_p2) target bundleno = 2067 (0x813), region = 88  ;;  %s4012_s4 = sld [smem:[#allocation11_spill]] (!%p550_p2) }
  0x10   : > { %s4013_s5 = sld [smem:[#allocation12_spill]] (!%p550_p2)  ;;  %p3085_p4 = scmp.ne.s32.totalorder (!%p550_p2), %s3642_s27, 0 }
  0x14   : > { %s3648_s16 = scalar_select %p626_p3, %s3642_s27, 1 }
  0x15   : > { %s4014_s25 = sld [smem:[#allocation9_spill]] (!%p3085_p4) }
  0x16   : > { %s3140_s28 = sshll.u32 %s3648_s16, 7  ;;  %s3080_s29 = sshll.u32 %s3648_s16, 2 }
  0x17   : > { %s3655_s18 = scalar_lea.vmem %s4011_s3, %s3140_s28  ;;  %s3660_s20 = scalar_lea.vmem %s4012_s4, %s3140_s28 }
  0x18   : > { %s3665_s23 = scalar_lea.vmem %s4013_s5, %s3140_s28  ;;  %s3670_s26 = scalar_lea.vmem %s3989_s6, %s3080_s29 }
  0x19   : > { %s3675_s0 = scalar_lea.vmem %s3990_s7, %s3080_s29  ;;  %s3680_s19 = scalar_lea.vmem %s3991_s8, %s3080_s29 }
  0x1a   : > { %s3143_s1 = sshll.u32 %s3648_s16, 5  ;;  %s660_s28 = scalar_lea.vmem %s3993_s10, %s3648_s16 }
  0x1b   : > { %s3690_s24 = scalar_lea.vmem %s3992_s9, %s3143_s1  ;;  %664 = sbr.rel (%p3085_p4) target bundleno = 233 (0xe9), region = 92 }
  0x1c   : > { %s4015_s30 = sld [smem:[#allocation8_spill]] (!%p3085_p4) }
  0x20   : > { %v667_v0 = vld [vmem:[%s4014_s25 + $0x8] sm:$0xff]  ;;  %v3536_v1 = vmov 0.0   ;;  %v666_v2 = vld [vmem:[%s4014_s25] sm:$0xff]  ;;  %vm3537_vm0 = vmmov 0   ;;  %vm675_vm1 = vcmask 130048   ;;  %vm749_vm2 = vcmask 261120  }
  0x21   : > { %3238 = vmatprep.subr.mxu0 %v3536_v1  ;;  %3242 = vmatprep.mubr.msk.f32.mxu0 %vm3537_vm0, %v3536_v1  ;;  %v3086_v4 = vld [vmem:[%s3985_s2] ss:$0 sm:$0xff] }
  0x22   : > { %3239 = vmatpush3.msra.mxu0 %v667_v0  ;;  %v665_v3 = vld [vmem:[%s4015_s30] sm:$0xff] }
  0x23   : > { %3240 = vmatprep.subr.mxu0 %v3536_v1 }
  0x24   : > { %3241 = vmatpush3.msra.mxu0 %v666_v2 }
  0x25   : > { %3243 = vmatmul.mubr.msk.f32.vlgmr.msra.gmra.mxu0 %vm675_vm1, %v665_v3 }
  0xe5   : > { %v745_v5 = vpop.f32.mrf.mxu0 }
  0xe6   : > { %v746_v6 = vadd.f32 %v3086_v4, %v745_v5 }
  0xe7   : > { %v3244_v7 = vpop.f32.mrf.mxu0 }
  0xe8   : > { %750 = vst.msk [vmem:[#allocation2] sm:$0xff] %vm749_vm2, %v746_v6 }
  0xe9 PF: > { %v755_v8 = vld [vmem:[%s3655_s18 + $0x18] sm:$0xff]  ;;  %v3538_v10 = vmov 0.0   ;;  %v754_v11 = vld [vmem:[%s3655_s18 + $0x10] sm:$0xff]  ;;  %v753_v13 = vld [vmem:[%s3655_s18 + $0x8] sm:$0xff]  ;;  %vm796_vm3 = vcmask 261120   ;;  %vm3539_vm4 = vmmov 0  }
  0xea   : > { %v759_v9 = vld [vmem:[%s3655_s18 + $0x38] sm:$0xff]  ;;  %3245 = vmatprep.subr.mxu0 %v3538_v10  ;;  %3256 = vmatprep.subr.mxu1 %v3538_v10  ;;  %v758_v12 = vld [vmem:[%s3655_s18 + $0x30] sm:$0xff]  ;;  %v757_v14 = vld [vmem:[%s3655_s18 + $0x28] sm:$0xff]  ;;  %vm1732_vm5 = vcmask 64512   ;;  %p3131_p5 = scmp.ne.s32.totalorder %s3642_s27, 1 }
  0xeb   : > { %3246 = vmatpush3.msra.mxu0 %v755_v8  ;;  %3257 = vmatpush3.msra.mxu1 %v759_v9  ;;  %v752_v15 = vld [vmem:[%s3655_s18] sm:$0xff]  ;;  %v763_v18 = vld [vmem:[%s3655_s18 + $0x58] sm:$0xff]  ;;  %v762_v20 = vld [vmem:[%s3655_s18 + $0x50] sm:$0xff]  ;;  %s4016_s21 = sld [smem:[#allocation13_spill]] (!%p3131_p5) }
  0xec   : > { %3247 = vmatprep.subr.mxu0 %v3538_v10  ;;  %3258 = vmatprep.subr.mxu1 %v3538_v10  ;;  %v756_v16 = vld [vmem:[%s3655_s18 + $0x20] sm:$0xff]  ;;  %v767_v19 = vld [vmem:[%s3655_s18 + $0x78] sm:$0xff]  ;;  %v766_v21 = vld [vmem:[%s3655_s18 + $0x70] sm:$0xff] }
  0xed   : > { %3248 = vmatpush3.msra.mxu0 %v754_v11  ;;  %3259 = vmatpush3.msra.mxu1 %v758_v12  ;;  %v761_v22 = vld [vmem:[%s3655_s18 + $0x48] sm:$0xff]  ;;  %v760_v24 = vld [vmem:[%s3655_s18 + $0x40] sm:$0xff]  ;;  %v1087_v26 = vld [vmem:[%s3660_s20 + $0x18] sm:$0xff] }
  0xee   : > { %3249 = vmatprep.subr.mxu0 %v3538_v10  ;;  %3260 = vmatprep.subr.mxu1 %v3538_v10  ;;  %v765_v23 = vld [vmem:[%s3655_s18 + $0x68] sm:$0xff]  ;;  %v764_v25 = vld [vmem:[%s3655_s18 + $0x60] sm:$0xff]  ;;  %v1091_v27 = vld [vmem:[%s3660_s20 + $0x38] sm:$0xff] }
  0xef   : > { %3250 = vmatpush3.msra.mxu0 %v753_v13  ;;  %3261 = vmatpush3.msra.mxu1 %v757_v14  ;;  %v3719_v17 = vld [vmem:[#allocation2] sm:$0xff]  ;;  %v1086_v28 = vld [vmem:[%s3660_s20 + $0x10] sm:$0xff]  ;;  %v1085_v30 = vld [vmem:[%s3660_s20 + $0x8] sm:$0xff] }
  0xf0   : > { %3251 = vmatprep.subr.mxu0 %v3538_v10  ;;  %3262 = vmatprep.subr.mxu1 %v3538_v10  ;;  %v1090_v29 = vld [vmem:[%s3660_s20 + $0x30] sm:$0xff]  ;;  %v1089_v31 = vld [vmem:[%s3660_s20 + $0x28] sm:$0xff]  ;;  %v1084_v32 = vld [vmem:[%s3660_s20] sm:$0xff] }
  0xf1   : > { %3252 = vmatpush3.msra.mxu0 %v752_v15  ;;  %3253 = vmatprep.mubr.msk.f32.mxu0 %vm3539_vm4, %v3538_v10  ;;  %v1088_v33 = vld [vmem:[%s3660_s20 + $0x20] sm:$0xff]  ;;  %v1095_v34 = vld [vmem:[%s3660_s20 + $0x58] sm:$0xff]  ;;  %v1094_v36 = vld [vmem:[%s3660_s20 + $0x50] sm:$0xff] }
  0xf2   : > { %3263 = vmatpush3.msra.mxu1 %v756_v16  ;;  %3254 = vmatmul.mubr.msk.f32.vlgmr.msra.gmra.mxu0 %vm796_vm3, %v3719_v17  ;;  %v1099_v35 = vld [vmem:[%s3660_s20 + $0x78] sm:$0xff]  ;;  %v1098_v37 = vld [vmem:[%s3660_s20 + $0x70] sm:$0xff]  ;;  %v1093_v38 = vld [vmem:[%s3660_s20 + $0x48] sm:$0xff] }
  0xf3   : > { %3264 = vmatprep.mubr.msk.f32.mxu1 %vm3539_vm4, %v3538_v10  ;;  %3267 = vmatprep.subr.mxu0 %v3538_v10  ;;  %v1097_v39 = vld [vmem:[%s3660_s20 + $0x68] sm:$0xff]  ;;  %v1092_v40 = vld [vmem:[%s3660_s20 + $0x40] sm:$0xff]  ;;  %v1411_v42 = vld [vmem:[%s3665_s23 + $0x18] sm:$0xff] }
  0xf4   : > { %3278 = vmatprep.subr.mxu1 %v3538_v10  ;;  %3265 = vmatmul.mubr.msk.f32.vlgmr.msra.gmra.mxu1 %vm796_vm3, %v3719_v17  ;;  %v1096_v41 = vld [vmem:[%s3660_s20 + $0x60] sm:$0xff]  ;;  %v1415_v43 = vld [vmem:[%s3665_s23 + $0x38] sm:$0xff]  ;;  %v1410_v44 = vld [vmem:[%s3665_s23 + $0x10] sm:$0xff] }
  0xf5   : > { %3268 = vmatpush3.msra.mxu0 %v763_v18  ;;  %3279 = vmatpush3.msra.mxu1 %v767_v19  ;;  %v1414_v45 = vld [vmem:[%s3665_s23 + $0x30] sm:$0xff]  ;;  %v1409_v46 = vld [vmem:[%s3665_s23 + $0x8] sm:$0xff]  ;;  %v1408_v48 = vld [vmem:[%s3665_s23] sm:$0xff] }
  0xf6   : > { %3269 = vmatprep.subr.mxu0 %v3538_v10  ;;  %3280 = vmatprep.subr.mxu1 %v3538_v10  ;;  %v1413_v47 = vld [vmem:[%s3665_s23 + $0x28] sm:$0xff]  ;;  %v1412_v49 = vld [vmem:[%s3665_s23 + $0x20] sm:$0xff]  ;;  %v1419_v50 = vld [vmem:[%s3665_s23 + $0x58] sm:$0xff] }
  0xf7   : > { %3270 = vmatpush3.msra.mxu0 %v762_v20  ;;  %3281 = vmatpush3.msra.mxu1 %v766_v21  ;;  %v1423_v51 = vld [vmem:[%s3665_s23 + $0x78] sm:$0xff]  ;;  %v1418_v52 = vld [vmem:[%s3665_s23 + $0x50] sm:$0xff]  ;;  %v1417_v54 = vld [vmem:[%s3665_s23 + $0x48] sm:$0xff] }
  0xf8   : > { %3271 = vmatprep.subr.mxu0 %v3538_v10  ;;  %3282 = vmatprep.subr.mxu1 %v3538_v10  ;;  %v1422_v53 = vld [vmem:[%s3665_s23 + $0x70] sm:$0xff]  ;;  %v1421_v55 = vld [vmem:[%s3665_s23 + $0x68] sm:$0xff]  ;;  %v1416_v56 = vld [vmem:[%s3665_s23 + $0x40] sm:$0xff] }
  0xf9   : > { %3272 = vmatpush3.msra.mxu0 %v761_v22  ;;  %3283 = vmatpush3.msra.mxu1 %v765_v23  ;;  %v1420_v57 = vld [vmem:[%s3665_s23 + $0x60] sm:$0xff] }
  0xfa   : > { %3273 = vmatprep.subr.mxu0 %v3538_v10  ;;  %3284 = vmatprep.subr.mxu1 %v3538_v10  ;;  %v3088_v2 = vld [vmem:[%s3670_s26] ss:$0 sm:$0xff]  ;;  %v3089_v3 = vld [vmem:[%s3670_s26 + $0x1] ss:$0 sm:$0xff]  ;;  %v3090_v18 = vld [vmem:[%s3670_s26 + $0x2] ss:$0 sm:$0xff] }
  0xfb   : > { %3274 = vmatpush3.msra.mxu0 %v760_v24  ;;  %3275 = vmatprep.mubr.msk.f32.mxu0 %vm3539_vm4, %v3538_v10  ;;  %v3096_v4 = vld [vmem:[%s3675_s0] ss:$0 sm:$0xff]  ;;  %v3097_v5 = vld [vmem:[%s3675_s0 + $0x1] ss:$0 sm:$0xff]  ;;  %v3091_v19 = vld [vmem:[%s3670_s26 + $0x3] ss:$0 sm:$0xff] }
  0xfc   : > { %3285 = vmatpush3.msra.mxu1 %v764_v25  ;;  %3276 = vmatmul.mubr.msk.f32.vlgmr.msra.gmra.mxu0 %vm796_vm3, %v3719_v17  ;;  %v3098_v20 = vld [vmem:[%s3675_s0 + $0x2] ss:$0 sm:$0xff]  ;;  %v3099_v21 = vld [vmem:[%s3675_s0 + $0x3] ss:$0 sm:$0xff]  ;;  %s2863_s26 = sld [smem:[#allocation3]] (!%p3131_p5) }
  0xfd   : > { %3286 = vmatprep.mubr.msk.f32.mxu1 %vm3539_vm4, %v3538_v10  ;;  %3289 = vmatprep.subr.mxu0 %v3538_v10 }
  0xfe   : > { %3300 = vmatprep.subr.mxu1 %v3538_v10  ;;  %3287 = vmatmul.mubr.msk.f32.vlgmr.msra.gmra.mxu1 %vm796_vm3, %v3719_v17 }
  0xff   : > { %3290 = vmatpush3.msra.mxu0 %v1087_v26  ;;  %3301 = vmatpush3.msra.mxu1 %v1091_v27 }
 0x100   : > { %3291 = vmatprep.subr.mxu0 %v3538_v10  ;;  %3302 = vmatprep.subr.mxu1 %v3538_v10 }
 0x101   : > { %3292 = vmatpush3.msra.mxu0 %v1086_v28  ;;  %3303 = vmatpush3.msra.mxu1 %v1090_v29 }
 0x102   : > { %3293 = vmatprep.subr.mxu0 %v3538_v10  ;;  %3304 = vmatprep.subr.mxu1 %v3538_v10 }
 0x103   : > { %3294 = vmatpush3.msra.mxu0 %v1085_v30  ;;  %3305 = vmatpush3.msra.mxu1 %v1089_v31 }
 0x104   : > { %3295 = vmatprep.subr.mxu0 %v3538_v10  ;;  %3306 = vmatprep.subr.mxu1 %v3538_v10 }
 0x105   : > { %3296 = vmatpush3.msra.mxu0 %v1084_v32  ;;  %3297 = vmatprep.mubr.msk.f32.mxu0 %vm3539_vm4, %v3538_v10  ;;  %v3104_v32 = vld [vmem:[%s3680_s19] ss:$0 sm:$0xff] }
 0x106   : > { %3307 = vmatpush3.msra.mxu1 %v1088_v33  ;;  %3308 = vmatprep.mubr.msk.f32.mxu1 %vm3539_vm4, %v3538_v10  ;;  %v3105_v33 = vld [vmem:[%s3680_s19 + $0x1] ss:$0 sm:$0xff] }
 0x107   : > { %3298 = vmatmul.mubr.msk.f32.vlgmr.msra.gmra.mxu0 %vm796_vm3, %v3719_v17  ;;  %3309 = vmatmul.mubr.msk.f32.vlgmr.msra.gmra.mxu1 %vm796_vm3, %v3719_v17 }
 0x108   : > { %3311 = vmatprep.subr.mxu0 %v3538_v10  ;;  %3322 = vmatprep.subr.mxu1 %v3538_v10 }
 0x109   : > { %3312 = vmatpush3.msra.mxu0 %v1095_v34  ;;  %3323 = vmatpush3.msra.mxu1 %v1099_v35 }
 0x10a   : > { %3313 = vmatprep.subr.mxu0 %v3538_v10  ;;  %3324 = vmatprep.subr.mxu1 %v3538_v10 }
 0x10b   : > { %3314 = vmatpush3.msra.mxu0 %v1094_v36  ;;  %3325 = vmatpush3.msra.mxu1 %v1098_v37 }
 0x10c   : > { %3315 = vmatprep.subr.mxu0 %v3538_v10  ;;  %3326 = vmatprep.subr.mxu1 %v3538_v10 }
 0x10d   : > { %3316 = vmatpush3.msra.mxu0 %v1093_v38  ;;  %3327 = vmatpush3.msra.mxu1 %v1097_v39 }
 0x10e   : > { %3317 = vmatprep.subr.mxu0 %v3538_v10  ;;  %3328 = vmatprep.subr.mxu1 %v3538_v10 }
 0x10f   : > { %3318 = vmatpush3.msra.mxu0 %v1092_v40  ;;  %3319 = vmatprep.mubr.msk.f32.mxu0 %vm3539_vm4, %v3538_v10 }
 0x110   : > { %3329 = vmatpush3.msra.mxu1 %v1096_v41  ;;  %3330 = vmatprep.mubr.msk.f32.mxu1 %vm3539_vm4, %v3538_v10 }
 0x111   : > { %3320 = vmatmul.mubr.msk.f32.vlgmr.msra.gmra.mxu0 %vm796_vm3, %v3719_v17  ;;  %3331 = vmatmul.mubr.msk.f32.vlgmr.msra.gmra.mxu1 %vm796_vm3, %v3719_v17 }
 0x112   : > { %3333 = vmatprep.subr.mxu0 %v3538_v10  ;;  %3344 = vmatprep.subr.mxu1 %v3538_v10 }
 0x113   : > { %3341 = vmatprep.mubr.msk.f32.mxu0 %vm3539_vm4, %v3538_v10  ;;  %3352 = vmatprep.mubr.msk.f32.mxu1 %vm3539_vm4, %v3538_v10 }
 0x114   : > { %3334 = vmatpush3.msra.mxu0 %v1411_v42  ;;  %3345 = vmatpush3.msra.mxu1 %v1415_v43 }
 0x115   : > { %3335 = vmatprep.subr.mxu0 %v3538_v10  ;;  %3346 = vmatprep.subr.mxu1 %v3538_v10 }
 0x116   : > { %3336 = vmatpush3.msra.mxu0 %v1410_v44  ;;  %3347 = vmatpush3.msra.mxu1 %v1414_v45 }
 0x117   : > { %3337 = vmatprep.subr.mxu0 %v3538_v10  ;;  %3348 = vmatprep.subr.mxu1 %v3538_v10 }
 0x118   : > { %3338 = vmatpush3.msra.mxu0 %v1409_v46  ;;  %3349 = vmatpush3.msra.mxu1 %v1413_v47 }
 0x119   : > { %3339 = vmatprep.subr.mxu0 %v3538_v10  ;;  %3350 = vmatprep.subr.mxu1 %v3538_v10 }
 0x11a   : > { %3340 = vmatpush3.msra.mxu0 %v1408_v48  ;;  %3351 = vmatpush3.msra.mxu1 %v1412_v49 }
 0x11b   : > { %3355 = vmatprep.subr.mxu0 %v3538_v10  ;;  %3366 = vmatprep.subr.mxu1 %v3538_v10 }
 0x11c   : > { %3342 = vmatmul.mubr.msk.f32.vlgmr.msra.gmra.mxu0 %vm796_vm3, %v3719_v17  ;;  %3353 = vmatmul.mubr.msk.f32.vlgmr.msra.gmra.mxu1 %vm796_vm3, %v3719_v17 }
 0x11d   : > { %3356 = vmatpush3.msra.mxu0 %v1419_v50  ;;  %3367 = vmatpush3.msra.mxu1 %v1423_v51 }
 0x11e   : > { %3357 = vmatprep.subr.mxu0 %v3538_v10  ;;  %3368 = vmatprep.subr.mxu1 %v3538_v10 }
 0x11f   : > { %3358 = vmatpush3.msra.mxu0 %v1418_v52  ;;  %3369 = vmatpush3.msra.mxu1 %v1422_v53 }
 0x120   : > { %3359 = vmatprep.subr.mxu0 %v3538_v10  ;;  %3370 = vmatprep.subr.mxu1 %v3538_v10 }
 0x121   : > { %3360 = vmatpush3.msra.mxu0 %v1417_v54  ;;  %3371 = vmatpush3.msra.mxu1 %v1421_v55 }
 0x122   : > { %3361 = vmatprep.subr.mxu0 %v3538_v10  ;;  %3372 = vmatprep.subr.mxu1 %v3538_v10 }
 0x123   : > { %3362 = vmatpush3.msra.mxu0 %v1416_v56  ;;  %3363 = vmatprep.mubr.msk.f32.mxu0 %vm3539_vm4, %v3538_v10 }
 0x124   : > { %3373 = vmatpush3.msra.mxu1 %v1420_v57  ;;  %3374 = vmatprep.mubr.msk.f32.mxu1 %vm3539_vm4, %v3538_v10 }
 0x125   : > { %3364 = vmatmul.mubr.msk.f32.vlgmr.msra.gmra.mxu0 %vm796_vm3, %v3719_v17  ;;  %3375 = vmatmul.mubr.msk.f32.vlgmr.msra.gmra.mxu1 %vm796_vm3, %v3719_v17 }
 0x126   : > { %3377 = vmatprep.subr.mxu0 %v3538_v10  ;;  %3382 = vmatprep.subr.mxu1 %v3538_v10 }
 0x127   : > { %3379 = vmatprep.mubr.msk.f32.mxu0 %vm3539_vm4, %v3538_v10  ;;  %3384 = vmatprep.mubr.msk.f32.mxu1 %vm3539_vm4, %v3538_v10 }
 0x1b2   : > { %v866_v58 = vpop.f32.mrf.mxu0 }
 0x1b3   : > { %v867_v6 = vadd.f32 %v3088_v2, %v866_v58  ;;  %v3106_v2 = vld [vmem:[%s3680_s19 + $0x2] ss:$0 sm:$0xff] }
 0x1b4   : > { %v3255_v59 = vpop.f32.mrf.mxu0  ;;  %v936_v60 = vpop.f32.mrf.mxu1 }
 0x1b5   : > { %v937_v7 = vadd.f32 %v3089_v3, %v936_v60  ;;  %v1080_v15 = vmul.f32 0.35355338, %v867_v6 }
 0x1b6   : > { %v3266_v61 = vpop.f32.mrf.mxu1 }
 0x1b7   : > { %v1081_v16 = vmul.f32 0.35355338, %v937_v7  ;;  %v3107_v7 = vld [vmem:[%s3680_s19 + $0x3] ss:$0 sm:$0xff] }
 0x1bc   : > { %v1006_v62 = vpop.f32.mrf.mxu0 }
 0x1bd   : > { %v1007_v22 = vadd.f32 %v3090_v18, %v1006_v62  ;;  %v2373_v18 = vld [vmem:[%s3690_s24] sm:$0xff] }
 0x1be   : > { %v3277_v63 = vpop.f32.mrf.mxu0  ;;  %v1076_v0 = vpop.f32.mrf.mxu1 }
 0x1bf   : > { %v1077_v23 = vadd.f32 %v3091_v19, %v1076_v0  ;;  %v1082_v30 = vmul.f32 0.35355338, %v1007_v22  ;;  %v2374_v19 = vld [vmem:[%s3690_s24 + $0x8] sm:$0xff] }
 0x1c0   : > { %v3288_v1 = vpop.f32.mrf.mxu1 }
 0x1c1   : > { %v1083_v31 = vmul.f32 0.35355338, %v1077_v23 }
 0x1c7   : > { %v1194_v8 = vpop.f32.mrf.mxu0  ;;  %v1264_v9 = vpop.f32.mrf.mxu1 }
 0x1c8   : > { %v1195_v11 = vadd.f32 %v3096_v4, %v1194_v8  ;;  %v1265_v12 = vadd.f32 %v3097_v5, %v1264_v9 }
 0x1c9   : > { %v3299_v13 = vpop.f32.mrf.mxu0  ;;  %v3310_v14 = vpop.f32.mrf.mxu1 }
 0x1ca   : > { %3378 = vmatpush3.xpose.msk.msra.mxu0 %vm1732_vm5, %v1195_v11  ;;  %3383 = vmatpush3.xpose.msk.msra.mxu1 %vm1732_vm5, %v1265_v12 }
 0x1cb   : > { %3387 = vmatprep.subr.mxu0 %v3538_v10  ;;  %3392 = vmatprep.subr.mxu1 %v3538_v10 }
 0x1cd   : > { %3380 = vmatmul.mubr.msk.f32.vlgmr.msra.gmra.mxu0 %vm1732_vm5, %v1080_v15  ;;  %3385 = vmatmul.mubr.msk.f32.vlgmr.msra.gmra.mxu1 %vm1732_vm5, %v1081_v16 }
 0x1ce   : > { %3389 = vmatprep.mubr.msk.f32.mxu0 %vm3539_vm4, %v3538_v10  ;;  %3394 = vmatprep.mubr.msk.f32.mxu1 %vm3539_vm4, %v3538_v10 }
 0x1d1   : > { %v1334_v24 = vpop.f32.mrf.mxu0  ;;  %v1404_v25 = vpop.f32.mrf.mxu1 }
 0x1d2   : > { %v1335_v26 = vadd.f32 %v3098_v20, %v1334_v24  ;;  %v1405_v27 = vadd.f32 %v3099_v21, %v1404_v25 }
 0x1d3   : > { %v3321_v28 = vpop.f32.mrf.mxu0  ;;  %v3332_v29 = vpop.f32.mrf.mxu1 }
 0x1d4   : > { %3388 = vmatpush3.xpose.msk.msra.mxu0 %vm1732_vm5, %v1335_v26  ;;  %3393 = vmatpush3.xpose.msk.msra.mxu1 %vm1732_vm5, %v1405_v27  ;;  %v2375_v27 = vld [vmem:[%s3690_s24 + $0x10] sm:$0xff] }
 0x1d5   : > { %3397 = vmatprep.subr.mxu0 %v3538_v10  ;;  %3402 = vmatprep.subr.mxu1 %v3538_v10 }
 0x1d7   : > { %3390 = vmatmul.mubr.msk.f32.vlgmr.msra.gmra.mxu0 %vm1732_vm5, %v1082_v30  ;;  %3395 = vmatmul.mubr.msk.f32.vlgmr.msra.gmra.mxu1 %vm1732_vm5, %v1083_v31 }
 0x1d8   : > { %3399 = vmatprep.mubr.msk.f32.mxu0 %vm3539_vm4, %v3538_v10  ;;  %3404 = vmatprep.mubr.msk.f32.mxu1 %vm3539_vm4, %v3538_v10 }
 0x1dc   : > { %v1518_v34 = vpop.f32.mrf.mxu0  ;;  %v1588_v35 = vpop.f32.mrf.mxu1 }
 0x1dd   : > { %v1519_v36 = vadd.f32 %v3104_v32, %v1518_v34  ;;  %v1589_v37 = vadd.f32 %v3105_v33, %v1588_v35  ;;  %v2376_v32 = vld [vmem:[%s3690_s24 + $0x18] sm:$0xff] }
 0x1de   : > { %v3343_v38 = vpop.f32.mrf.mxu0  ;;  %v3354_v39 = vpop.f32.mrf.mxu1 }
 0x1df   : > { %3398 = vmatpush3.msra.mxu0 %v1519_v36  ;;  %3403 = vmatpush3.msra.mxu1 %v1589_v37 }
 0x1e0   : > { %3407 = vmatprep.subr.mxu0 %v3538_v10  ;;  %3412 = vmatprep.subr.mxu1 %v3538_v10 }
 0x1e5   : > { %v1658_v40 = vpop.f32.mrf.mxu0  ;;  %v1728_v41 = vpop.f32.mrf.mxu1 }
 0x1e6   : > { %v1659_v6 = vadd.f32 %v3106_v2, %v1658_v40  ;;  %v1729_v11 = vadd.f32 %v3107_v7, %v1728_v41 }
 0x1e7   : > { %v3365_v42 = vpop.f32.mrf.mxu0  ;;  %v3376_v43 = vpop.f32.mrf.mxu1 }
 0x28d   : > { %v1805_v44 = vpop.f32.mrf.mxu0  ;;  %v1881_v45 = vpop.f32.mrf.mxu1 }
 0x28e   : > { %v2037_v46 = vsel %vm1732_vm5, %v1805_v44, -inf  ;;  %v2040_v49 = vsel %vm1732_vm5, %v1881_v45, -inf }
 0x28f   : > { %v3386_v47 = vpop.f32.mrf.mxu1  ;;  %2038 = vmax.xlane.f32.xlu0 %v2037_v46  ;;  %v3381_v48 = vpop.f32.mrf.mxu0 }
 0x293   : > { %2041 = vmax.xlane.f32.xlu0 %v2040_v49 }
 0x297   : > { %v1957_v50 = vpop.f32.mrf.mxu0  ;;  %v2033_v51 = vpop.f32.mrf.mxu1 }
 0x298   : > { %v2043_v52 = vsel %vm1732_vm5, %v1957_v50, -inf  ;;  %v2046_v55 = vsel %vm1732_vm5, %v2033_v51, -inf }
 0x299   : > { %v3396_v53 = vpop.f32.mrf.mxu1  ;;  %2044 = vmax.xlane.f32.xlu1 %v2043_v52  ;;  %v3391_v54 = vpop.f32.mrf.mxu0 }
 0x29a   : > { %v3128_v54 = vld [vmem:[%s660_s28] ss:$0 sm:$0xff] }
 0x29d   : > { %2047 = vmax.xlane.f32.xlu1 %v2046_v55 }
 0x318   : > { %v2039_v56 = vpop.xlane.xlu0 %2038 }
 0x319   : > { %v2049_v57 = vsub.f32 %v1805_v44, %v2039_v56 }
 0x31b   : > { %v2053_v58 = vmul.f32 1.442695, %v2049_v57 }
 0x31c   : > { %v2042_v59 = vpop.xlane.xlu0 %2041 }
 0x31d   : > { %3474 = vpow2.f32 %v2053_v58  ;;  %v2050_v60 = vsub.f32 %v1881_v45, %v2042_v59 }
 0x31f   : > { %v2055_v61 = vmul.f32 1.442695, %v2050_v60 }
 0x321   : > { %3476 = vpow2.f32 %v2055_v61 }
 0x322   : > { %v2045_v62 = vpop.xlane.xlu1 %2044 }
 0x323   : > { %v2051_v63 = vsub.f32 %v1957_v50, %v2045_v62 }
 0x325   : > { %v2057_v0 = vmul.f32 1.442695, %v2051_v63 }
 0x326   : > { %v2048_v1 = vpop.xlane.xlu1 %2047 }
 0x327   : > { %3478 = vpow2.f32 %v2057_v0  ;;  %v2052_v3 = vsub.f32 %v2033_v51, %v2048_v1 }
 0x329   : > { %v2059_v4 = vmul.f32 1.442695, %v2052_v3 }
 0x32a   : > { %v3475_v5 = vpop.eup %3474 }
 0x32b   : > { %3480 = vpow2.f32 %v2059_v4  ;;  %3400 = vmatmul.mubr.msk.f32.vlgmr.msra.gmra.mxu0 %vm1732_vm5, %v3475_v5  ;;  %v2061_v8 = vsel %vm1732_vm5, %v3475_v5, 0.0  ;;  %v3129_v4 = vld [vmem:[%s3994_s11] ss:$0 sm:$0xff] }
 0x32c   : > { %3408 = vmatpush3.msra.mxu0 %v1659_v6  ;;  %2062 = vadd.xlane.f32.xlu0 %v2061_v8  ;;  %v3130_v6 = vld [vmem:[%s3995_s12] ss:$0 sm:$0xff] }
 0x32d   : > { %3409 = vmatprep.mubr.msk.f32.mxu0 %vm3539_vm4, %v3538_v10  ;;  %3417 = vmatprep.subr.mxu0 %v3538_v10 }
 0x32e   : > { %v3477_v9 = vpop.eup %3476 }
 0x32f   : > { %3405 = vmatmul.mubr.msk.f32.vlgmr.msra.gmra.mxu1 %vm1732_vm5, %v3477_v9  ;;  %v2064_v12 = vsel %vm1732_vm5, %v3477_v9, 0.0 }
 0x330   : > { %3413 = vmatpush3.msra.mxu1 %v1729_v11  ;;  %2065 = vadd.xlane.f32.xlu1 %v2064_v12 }
 0x331   : > { %3414 = vmatprep.mubr.msk.f32.mxu1 %vm3539_vm4, %v3538_v10  ;;  %3422 = vmatprep.subr.mxu1 %v3538_v10 }
 0x334   : > { %v3479_v13 = vpop.eup %3478 }
 0x335   : > { %3410 = vmatmul.mubr.msk.f32.vlgmr.msra.gmra.mxu0 %vm1732_vm5, %v3479_v13  ;;  %v2067_v14 = vsel %vm1732_vm5, %v3479_v13, 0.0 }
 0x336   : > { %2068 = vadd.xlane.f32.xlu0 %v2067_v14  ;;  %3419 = vmatprep.mubr.msk.f32.mxu0 %vm3539_vm4, %v3538_v10 }
 0x337   : > { %3418 = vmatpush3.msra.mxu0 %v2373_v18 }
 0x338   : > { %v3481_v15 = vpop.eup %3480  ;;  %3427 = vmatprep.subr.mxu0 %v3538_v10 }
 0x339   : > { %3415 = vmatmul.mubr.msk.f32.vlgmr.msra.gmra.mxu1 %vm1732_vm5, %v3481_v15  ;;  %v2070_v16 = vsel %vm1732_vm5, %v3481_v15, 0.0 }
 0x33a   : > { %2071 = vadd.xlane.f32.xlu1 %v2070_v16  ;;  %3424 = vmatprep.mubr.msk.f32.mxu1 %vm3539_vm4, %v3538_v10 }
 0x33b   : > { %3423 = vmatpush3.msra.mxu1 %v2374_v19 }
 0x33c   : > { %3432 = vmatprep.subr.mxu1 %v3538_v10 }
 0x3b5   : > { %v2063_v20 = vpop.xlane.xlu0 %2062 }
 0x3b6   : > { %3482 = vrcp.f32 %v2063_v20 }
 0x3b9   : > { %v2066_v21 = vpop.xlane.xlu1 %2065 }
 0x3ba   : > { %3484 = vrcp.f32 %v2066_v21 }
 0x3bf   : > { %v2069_v22 = vpop.xlane.xlu0 %2068 }
 0x3c0   : > { %3486 = vrcp.f32 %v2069_v22 }
 0x3c3   : > { %v2072_v23 = vpop.xlane.xlu1 %2071  ;;  %v3483_v24 = vpop.eup %3482 }
 0x3c4   : > { %3488 = vrcp.f32 %v2072_v23 }
 0x3c7   : > { %v3485_v29 = vpop.eup %3484 }
 0x3cd   : > { %v3487_v34 = vpop.eup %3486 }
 0x3d1   : > { %v3489_v38 = vpop.eup %3488 }
 0x3eb   : > { %v2142_v25 = vpop.f32.mrf.mxu0 }
 0x3ec   : > { %v2369_v26 = vmul.f32 %v3483_v24, %v2142_v25 }
 0x3ed   : > { %v3401_v28 = vpop.f32.mrf.mxu0 }
 0x3ee   : > { %3420 = vmatmul.mubr.msk.f32.vlgmr.msra.gmra.mxu0 %vm1732_vm5, %v2369_v26 }
 0x3ef   : > { %v2215_v30 = vpop.f32.mrf.mxu1  ;;  %3428 = vmatpush3.msra.mxu0 %v2375_v27  ;;  %3429 = vmatprep.mubr.msk.f32.mxu0 %vm3539_vm4, %v3538_v10 }
 0x3f0   : > { %v2370_v31 = vmul.f32 %v3485_v29, %v2215_v30 }
 0x3f1   : > { %v3406_v33 = vpop.f32.mrf.mxu1 }
 0x3f2   : > { %3425 = vmatmul.mubr.msk.f32.vlgmr.msra.gmra.mxu1 %vm1732_vm5, %v2370_v31 }
 0x3f3   : > { %3433 = vmatpush3.msra.mxu1 %v2376_v32  ;;  %3434 = vmatprep.mubr.msk.f32.mxu1 %vm3539_vm4, %v3538_v10 }
 0x3f5   : > { %v2288_v35 = vpop.f32.mrf.mxu0 }
 0x3f6   : > { %v2371_v36 = vmul.f32 %v3487_v34, %v2288_v35 }
 0x3f7   : > { %v3411_v37 = vpop.f32.mrf.mxu0 }
 0x3f8   : > { %3430 = vmatmul.mubr.msk.f32.vlgmr.msra.gmra.mxu0 %vm1732_vm5, %v2371_v36 }
 0x3f9   : > { %v2361_v39 = vpop.f32.mrf.mxu1 }
 0x3fa   : > { %v2372_v40 = vmul.f32 %v3489_v38, %v2361_v39 }
 0x3fb   : > { %v3416_v41 = vpop.f32.mrf.mxu1 }
 0x3fc   : > { %3435 = vmatmul.mubr.msk.f32.vlgmr.msra.gmra.mxu1 %vm1732_vm5, %v2372_v40 }
 0x4ae   : > { %v2446_v42 = vpop.f32.mrf.mxu0 }
 0x4af   : > { %v2669_v47 = vsel %vm796_vm3, %v2446_v42, 0.0 }
 0x4b0   : > { %v3421_v43 = vpop.f32.mrf.mxu0 }
 0x4b2   : > { %v2519_v44 = vpop.f32.mrf.mxu1 }
 0x4b3   : > { %v2670_v46 = vsel %vm796_vm3, %v2519_v44, 0.0 }
 0x4b4   : > { %v3426_v45 = vpop.f32.mrf.mxu1  ;;  %v2671_v49 = vadd.f32 %v2670_v46, %v2669_v47 }
 0x4b8   : > { %v2592_v10 = vpop.f32.mrf.mxu0 }
 0x4b9   : > { %v2672_v48 = vsel %vm796_vm3, %v2592_v10, 0.0 }
 0x4ba   : > { %v3431_v50 = vpop.f32.mrf.mxu0  ;;  %v2673_v51 = vadd.f32 %v2672_v48, %v2671_v49 }
 0x4bc   : > { %v2665_v52 = vpop.f32.mrf.mxu1 }
 0x4bd   : > { %v2674_v53 = vsel %vm796_vm3, %v2665_v52, 0.0 }
 0x4be   : > { %v2675_v55 = vadd.f32 %v2674_v53, %v2673_v51  ;;  %v3436_v56 = vpop.f32.mrf.mxu1 }
 0x4c0   : > { %v2683_v57 = vadd.f32 %v3128_v54, %v2675_v55 }
 0x4c2   : > { %v2684_v58 = vsel %vm796_vm3, %v2683_v57, 0.0 }
 0x4c3   : > { %2685 = vadd.xlane.f32.xlu0 %v2684_v58 }
 0x54c   : > { %v2686_v59 = vpop.xlane.xlu0 %2685 }
 0x54d   : > { %v2688_v60 = vmul.f32 0.03125, %v2686_v59 }
 0x54f   : > { %v2689_v61 = vsub.f32 %v2683_v57, %v2688_v60 }
 0x551   : > { %v2690_v62 = vmul.f32 %v2689_v61, %v2689_v61 }
 0x553   : > { %v2691_v63 = vsel %vm796_vm3, %v2690_v62, 0.0 }
 0x554   : > { %2692 = vadd.xlane.f32.xlu1 %v2691_v63 }
 0x5dd   : > { %v2693_v0 = vpop.xlane.xlu1 %2692 }
 0x5de   : > { %v2694_v1 = vmul.f32 0.03125, %v2693_v0 }
 0x5e0   : > { %v2695_v2 = vadd.f32 1e-05, %v2694_v1 }
 0x5e2   : > { %3490 = vrsqrt.f32 %v2695_v2 }
 0x5ef   : > { %v3491_v3 = vpop.eup %3490 }
 0x5f0   : > { %v2697_v5 = vmul.f32 %v3491_v3, %v2689_v61 }
 0x5f2   : > { %v2705_v7 = vmul.f32 %v3129_v4, %v2697_v5 }
 0x5f4   : > { %v2713_v8 = vadd.f32 %v3130_v6, %v2705_v7 }
 0x5f6   : > { %v2715_v9 = vmul.f32 0.70710677, %v2713_v8  ;;  %v2714_v36 = vmul.f32 0.5, %v2713_v8 }
 0x5f8   : > { %v2716_v11 = vand.u32 2147483647, %v2715_v9  ;;  %vm2738_vm6 = vcmp.lt.f32.partialorder %v2715_v9, 0.0 }
 0x5fa   : > { %v2717_v12 = vmul.f32 0.3275911, %v2716_v11  ;;  %v2732_v14 = vsub.f32 0.0, %v2716_v11 }
 0x5fc   : > { %v2718_v13 = vadd.f32 1.0, %v2717_v12  ;;  %v2733_v19 = vmul.f32 %v2732_v14, %v2716_v11 }
 0x5fe   : > { %3492 = vrcp.f32 %v2718_v13  ;;  %v2734_v22 = vmul.f32 1.442695, %v2733_v19 }
 0x600   : > { %3494 = vpow2.f32 %v2734_v22 }
 0x60b   : > { %v3493_v15 = vpop.eup %3492 }
 0x60c   : > { %v2720_v16 = vmul.f32 %v3493_v15, %v2718_v13 }
 0x60d   : > { %v3495_v31 = vpop.eup %3494 }
 0x60e   : > { %v2721_v18 = vsub.f32 2.0, %v2720_v16 }
 0x610   : > { %v2722_v20 = vmul.f32 %v3493_v15, %v2721_v18 }
 0x612   : > { %v2723_v21 = vmul.f32 1.0614054, %v2722_v20 }
 0x614   : > { %v2724_v23 = vadd.f32 -1.4531521, %v2723_v21 }
 0x616   : > { %v2725_v24 = vmul.f32 %v2724_v23, %v2722_v20 }
 0x618   : > { %v2726_v25 = vadd.f32 1.4214138, %v2725_v24 }
 0x61a   : > { %v2727_v26 = vmul.f32 %v2726_v25, %v2722_v20 }
 0x61c   : > { %v2728_v27 = vadd.f32 -0.28449672, %v2727_v26 }
 0x61e   : > { %v2729_v28 = vmul.f32 %v2728_v27, %v2722_v20 }
 0x620   : > { %v2730_v29 = vadd.f32 0.2548296, %v2729_v28 }
 0x622   : > { %v2731_v30 = vmul.f32 %v2730_v29, %v2722_v20 }
 0x624   : > { %v2736_v32 = vmul.f32 %v3495_v31, %v2731_v30 }
 0x626   : > { %v2737_v33 = vsub.f32 1.0, %v2736_v32 }
 0x628   : > { %v2739_v34 = vsub.f32 0.0, %v2737_v33 }
 0x62a   : > { %v2740_v35 = vsel %vm2738_vm6, %v2739_v34, %v2737_v33 }
 0x62b   : > { %v2741_v37 = vadd.f32 1.0, %v2740_v35 }
 0x62d   : > { %v2742_v38 = vmul.f32 %v2741_v37, %v2714_v36  ;;  %2748 = sbr.rel (%p3131_p5) target bundleno = 2046 (0x7fe), region = 96 }
 0x62f   : > { %v2743_v39 = vadd.f32 %v2742_v38, %v3719_v17 }
 0x631   : > { %2744 = vst.msk [vmem:[#allocation2] sm:$0xff] %vm796_vm3, %v2743_v39 }
 0x632   : > { %v2752_v40 = vld [vmem:[%s3996_s13 + $0x18] sm:$0xff]  ;;  %v3540_v41 = vmov 0.0   ;;  %v2751_v42 = vld [vmem:[%s3996_s13 + $0x10] sm:$0xff]  ;;  %vm3541_vm7 = vmmov 0   ;;  %v2750_v17 = vld [vmem:[%s3996_s13 + $0x8] sm:$0xff]  ;;  %v2864_v13 = vstv %s2863_s26  ;;  %vm2941_vm9 = vcmask 57344  }
 0x633   : > { %3437 = vmatprep.subr.mxu0 %v3540_v41  ;;  %3445 = vmatprep.mubr.msk.f32.mxu0 %vm3541_vm7, %v3540_v41  ;;  %v2749_v43 = vld [vmem:[%s3996_s13] sm:$0xff] }
 0x634   : > { %3438 = vmatpush3.msra.mxu0 %v2752_v40  ;;  %3448 = vmatprep.subr.mxu1 %v3540_v41  ;;  %v3132_v44 = vld [vmem:[%s3997_s14] ss:$0 sm:$0xff] }
 0x635   : > { %3439 = vmatprep.subr.mxu0 %v3540_v41  ;;  %3450 = vmatprep.mubr.msk.f32.mxu1 %vm3541_vm7, %v3540_v41  ;;  %v2862_v12 = vld [vmem:[%s4016_s21] sm:$0x1] }
 0x636   : > { %3440 = vmatpush3.msra.mxu0 %v2751_v42 }
 0x637   : > { %3441 = vmatprep.subr.mxu0 %v3540_v41 }
 0x638   : > { %3442 = vmatpush3.msra.mxu0 %v2750_v17 }
 0x639   : > { %3443 = vmatprep.subr.mxu0 %v3540_v41 }
 0x63a   : > { %3444 = vmatpush3.msra.mxu0 %v2749_v43 }
 0x63b   : > { %3446 = vmatmul.mubr.msk.f32.vlgmr.msra.gmra.mxu0 %vm796_vm3, %v2743_v39 }
 0x6fb   : > { %v2829_v45 = vpop.f32.mrf.mxu0 }
 0x6fc   : > { %v2830_v46 = vadd.f32 %v3132_v44, %v2829_v45 }
 0x6fd   : > { %v3447_v10 = vpop.f32.mrf.mxu0 }
 0x6fe   : > { %v2834_v47 = vmul.f32 0.70710677, %v2830_v46  ;;  %v2833_v8 = vmul.f32 0.5, %v2830_v46 }
 0x700   : > { %v2835_v48 = vand.u32 2147483647, %v2834_v47  ;;  %vm2857_vm8 = vcmp.lt.f32.partialorder %v2834_v47, 0.0 }
 0x702   : > { %v2836_v49 = vmul.f32 0.3275911, %v2835_v48  ;;  %v2851_v51 = vsub.f32 0.0, %v2835_v48 }
 0x704   : > { %v2837_v50 = vadd.f32 1.0, %v2836_v49  ;;  %v2852_v55 = vmul.f32 %v2851_v51, %v2835_v48 }
 0x706   : > { %3496 = vrcp.f32 %v2837_v50  ;;  %v2853_v57 = vmul.f32 1.442695, %v2852_v55 }
 0x708   : > { %3498 = vpow2.f32 %v2853_v57 }
 0x713   : > { %v3497_v52 = vpop.eup %3496 }
 0x714   : > { %v2839_v53 = vmul.f32 %v3497_v52, %v2837_v50 }
 0x715   : > { %v3499_v3 = vpop.eup %3498 }
 0x716   : > { %v2840_v54 = vsub.f32 2.0, %v2839_v53 }
 0x718   : > { %v2841_v56 = vmul.f32 %v3497_v52, %v2840_v54 }
 0x71a   : > { %v2842_v58 = vmul.f32 1.0614054, %v2841_v56 }
 0x71c   : > { %v2843_v59 = vadd.f32 -1.4531521, %v2842_v58 }
 0x71e   : > { %v2844_v60 = vmul.f32 %v2843_v59, %v2841_v56 }
 0x720   : > { %v2845_v61 = vadd.f32 1.4214138, %v2844_v60 }
 0x722   : > { %v2846_v62 = vmul.f32 %v2845_v61, %v2841_v56 }
 0x724   : > { %v2847_v63 = vadd.f32 -0.28449672, %v2846_v62 }
 0x726   : > { %v2848_v0 = vmul.f32 %v2847_v63, %v2841_v56 }
 0x728   : > { %v2849_v1 = vadd.f32 0.2548296, %v2848_v0 }
 0x72a   : > { %v2850_v2 = vmul.f32 %v2849_v1, %v2841_v56 }
 0x72c   : > { %v2855_v4 = vmul.f32 %v3499_v3, %v2850_v2 }
 0x72e   : > { %v2856_v5 = vsub.f32 1.0, %v2855_v4 }
 0x730   : > { %v2858_v6 = vsub.f32 0.0, %v2856_v5 }
 0x732   : > { %v2859_v7 = vsel %vm2857_vm8, %v2858_v6, %v2856_v5 }
 0x733   : > { %v2860_v9 = vadd.f32 1.0, %v2859_v7 }
 0x735   : > { %v2861_v11 = vmul.f32 %v2860_v9, %v2833_v8 }
 0x737   : > { %3449 = vmatpush3.xpose.msk.msra.mxu1 %vm796_vm3, %v2861_v11 }
 0x73a   : > { %3451 = vmatmul.mubr.msk.f32.vlgmr.msra.gmra.mxu1 %vm796_vm3, %v2862_v12 }
 0x7fa   : > { %v2937_v14 = vpop.f32.mrf.mxu1 }
 0x7fb   : > { %v2938_v15 = vadd.f32 %v2937_v14, %v2864_v13 }
 0x7fc   : > { %v3452_v16 = vpop.f32.mrf.mxu1 }
 0x7fd   : > { %2942 = vst.msk [vmem:[#allocation4] sm:$0x1] %vm2941_vm9, %v2938_v15 }
 0x7fe PF: > { %p3457_p6 = scmp.eq.s32.totalorder %s3642_s27, 1  ;;  %s3542_s18 = smov [#allocation4]  }
 0x7ff   : > { %s2950_s16 = sshll.u32 %s3542_s18, 4  ;;  %s2951_s16 = int_to_ptr.vmem [resolvable:$true] %s2950_s16 }
 0x800   : > { %s3500_s20 = scalar_lea.vmem %s2951_s16, 16  ;;  %s3506_s23 = scalar_lea.vmem %s2951_s16, 32 }
 0x801   : > { %p3501_p7 = scmp.ne.s32.totalorder %s2951_s16, %s3500_s20  ;;  %p3507_p10 = scmp.lt.s32.totalorder %s2951_s16, %s2951_s16 }
 0x802   : > { %p3508_p11 = scmp.lt.s32.totalorder %s3506_s23, %s3500_s20 }
 0x803   : > { %p3502_p8 = pnand %p3501_p7, %p3457_p6 }
 0x804   : > { %p3509_p12 = por %p3508_p11, %p3507_p10 }
 0x805   : > { %p3503_p9 = pneg %p3502_p8 }
 0x807   : > { %p3510_p13 = pnand %p3509_p12, %p3503_p9 }
 0x809   : > { %3513 = shalt.err (!%p3510_p13)
}
 0x80a   : > { %s4017_s28 = sld [smem:[#allocation14_spill]] }
 0x810   : > { %3454 = dma.vmem_to_hbm [thread:$0]  (%p3457_p6), %s2951_s16, 16, %s4017_s28, [#allocation5]  }
 0x811   : > { %3529 = dma.done.wait (%p3457_p6), [#allocation5], 16  }
 0x812   : > { %3531 = vsyncadd (%p3457_p6), [#allocation5], 4294967280 }
 0x813 PF: > { %s4018_s22 = sld [smem:[#allocation7_spill]] }
 0x819   : > { %s29_s26 = sadd.s32 1, %s4018_s22  }
 0x81a   : > { %p26_p0 = scmp.ge.s32.totalorder %s29_s26, 4  }
 0x81c   :  { %28 = sbr.rel (!%p26_p0) target bundleno = 10 (0xa), region = 144 }
 0x821   :  { %2963 = vsyncpa [#allocation5], 1 }
 0x822   :  { %2965 = vsyncpa [#allocation5 + $0x1], 1 }

</bundles_post_ra>
